<compile_context>
chip_gen: v5e
topology: v5e:2x2
jax: 0.10.0
libtpu: 0.0.40
codegen_flags: <defaults>
</compile_context>

<pallas_src>
import math

import jax
import jax.numpy as jnp
from jax.experimental import pallas as pl
from jax.experimental.pallas import tpu as pltpu

_LANE = 128


def _make_attention_kernel(n_heads: int, mxu_dtype):
    """Kernel body closed over static head count / MXU dtype."""

    def kernel(x_ref, mask_ref, wqkv_ref, bqkv_ref, wp_ref, bp_ref, o_ref):
        Bb, T, Cp = x_ref.shape
        H = n_heads
        Dp = Cp // H
        R = Bb * T

        # ---- fused QKV projection: one (R, Cp) @ (Cp, 3Cp) MXU pass ----
        x2 = x_ref[...].reshape(R, Cp).astype(mxu_dtype)
        qkv = jnp.dot(x2, wqkv_ref[...], preferred_element_type=jnp.float32)
        qkv = qkv + bqkv_ref[...]                       # single broadcast bias add (f32)

        # ---- one relayout for all of q/k/v ----
        # columns are ordered (qkv, head, d) by construction in the wrapper,
        # so a single reshape + transpose gives (Bb, 3H, T, Dp); q/k/v are then
        # cheap leading-dim slices (no lane relayout per tensor).
        qkv = qkv.reshape(Bb, T, 3 * H, Dp)
        qkv = jnp.transpose(qkv, (0, 2, 1, 3))          # (Bb, 3H, T, Dp)
        qh = qkv[:, 0 * H:1 * H].reshape(Bb * H, T, Dp).astype(mxu_dtype)
        kh = qkv[:, 1 * H:2 * H].reshape(Bb * H, T, Dp).astype(mxu_dtype)
        vh = qkv[:, 2 * H:3 * H].reshape(Bb * H, T, Dp).astype(mxu_dtype)

        # ---- scores (1/sqrt(D) already folded into wq/bq) + causal bias ----
        s = jnp.einsum("bqd,bkd->bqk", qh, kh,
                       preferred_element_type=jnp.float32)      # (Bb*H, T, T)
        s = s + mask_ref[...]                            # precomputed 0 / -1e30 bias

        # ---- numerically-stable softmax, normalization deferred past PV ----
        m = jnp.max(s, axis=-1, keepdims=True)
        p = jnp.exp(s - m)                               # f32, values in [0, 1]
        denom = jnp.sum(p, axis=-1, keepdims=True)

        att = jnp.einsum("bqk,bkd->bqd", p.astype(mxu_dtype), vh,
                         preferred_element_type=jnp.float32)    # (Bb*H, T, Dp) f32
        # deferred normalization: O(B*H*T*D) VPU work, reciprocal on the EUP,
        # applied to the f32 accumulator before the bf16 cast.
        att = att * pl.reciprocal(denom, approx=True)

        # back to (R, Cp) with the torch (t, head, d) channel ordering
        att = jnp.transpose(att.reshape(Bb, H, T, Dp), (0, 2, 1, 3)).reshape(R, Cp)
        att = att.astype(mxu_dtype)

        # ---- output projection ----
        out = jnp.dot(att, wp_ref[...],
                      preferred_element_type=jnp.float32) + bp_ref[...]
        o_ref[...] = out.reshape(Bb, T, Cp).astype(o_ref.dtype)

    return kernel


def _chip_defaults():
    """Generation-aware tiling / VMEM-budget defaults."""
    kind = ""
    try:
        kind = jax.devices()[0].device_kind.lower()
    except Exception:
        pass
    is_v7 = ("v7" in kind) or ("7x" in kind)

    vmem_cap = 64 * 1024 * 1024 if is_v7 else 128 * 1024 * 1024
    try:  # prefer the real number when the query is available
        vmem_cap = int(pltpu.get_tpu_info().vmem_capacity_bytes)
    except Exception:
        pass

    if is_v7:
        # 2 TensorCores, 64 MiB VMEM: keep >=4 grid steps so each core still
        # software-pipelines, and keep the footprint well under the cap.
        return dict(target_rows=256, min_steps=4,
                    vmem_limit=min(48 * 1024 * 1024, (3 * vmem_cap) // 4))
    # v5e / v6e: 1 TensorCore, 128 MiB VMEM -> fewer, larger steps.
    return dict(target_rows=512, min_steps=1,
                vmem_limit=min(64 * 1024 * 1024, (3 * vmem_cap) // 4))


def _vmem_bytes_estimate(bb, T, Cp, H, in_itemsize, mxu_itemsize=2):
    """Rough per-step VMEM footprint (I/O slabs double-buffered + temporaries)."""
    R = bb * T
    C3 = 3 * Cp
    io = 2 * 2 * R * Cp * in_itemsize                               # x + out slabs, 2 bufs each
    w = 2 * ((Cp * C3 + Cp * Cp) * mxu_itemsize + (C3 + Cp + T * T) * 4)
    tmp = (R * C3 * 4                                               # qkv f32
           + R * C3 * mxu_itemsize                                  # q/k/v bf16
           + 2 * bb * H * T * T * 4 + bb * H * T * T * mxu_itemsize  # scores / exp / p
           + R * Cp * (4 + mxu_itemsize + 4))                       # att f32/bf16, out f32
    return io + w + tmp


def _pick_batch_block(B, T, Cp, H, *, target_rows, min_steps, vmem_budget,
                      in_itemsize):
    """Largest divisor bb of B with bb*T <= target_rows, keeping >= min_steps
    grid steps (when possible) and an estimated footprint within budget."""
    required = max(1, min(min_steps, B))
    best = 1
    for bb in range(1, B + 1):
        if B % bb:
            continue
        if bb > 1 and bb * T > target_rows:
            continue
        if B // bb < required:
            continue
        if bb > 1 and _vmem_bytes_estimate(bb, T, Cp, H, in_itemsize) > vmem_budget:
            continue
        best = bb
    return best


def masked_causal_attention(x, params, n_heads: int, *, block_b=None,
                            mxu_dtype=jnp.bfloat16):
    """x: (B, T, C) float32.  params: dict of (in,out) weights and (1,C) biases."""
    B, T, C = x.shape
    H = n_heads
    assert C % H == 0
    D = C // H
    scale = 1.0 / math.sqrt(D)            # true head dim, not the padded one

    # ---- lane-dense channels: pad per-head dim so C_pad % 128 == 0 ----
    if C % _LANE != 0:
        step = _LANE // math.gcd(H, _LANE)
        D_pad = ((D + step - 1) // step) * step
    else:
        D_pad = D
    C_pad = H * D_pad

    def pad_head_cols(w, b):
        # pad the per-head output-channel groups of a (C, C) weight / (1, C) bias
        w3 = jnp.pad(w.reshape(C, H, D), ((0, 0), (0, 0), (0, D_pad - D)))
        b3 = jnp.pad(b.reshape(1, H, D), ((0, 0), (0, 0), (0, D_pad - D)))
        return w3.reshape(C, C_pad), b3.reshape(1, C_pad)

    # fold 1/sqrt(D) into wq AND bq (weight-side, one-time), then pad heads
    wq, bq = pad_head_cols(params["wq"] * scale, params["bq"] * scale)
    wk, bk = pad_head_cols(params["wk"], params["bk"])
    wv, bv = pad_head_cols(params["wv"], params["bv"])

    # fused QKV weight: column order (qkv, head, d) -> reshapes cleanly in-kernel
    wqkv = jnp.concatenate([wq, wk, wv], axis=1)                  # (C, 3*C_pad)
    wqkv = jnp.pad(wqkv, ((0, C_pad - C), (0, 0))).astype(mxu_dtype)
    bqkv = jnp.concatenate([bq, bk, bv], axis=1).astype(jnp.float32)

    # output projection: rows follow the head-padded channel layout
    wp3 = jnp.pad(params["wp"].reshape(H, D, C),
                  ((0, 0), (0, D_pad - D), (0, C_pad - C)))
    wp = wp3.reshape(C_pad, C_pad).astype(mxu_dtype)
    bp = jnp.pad(params["bp"], ((0, 0), (0, C_pad - C))).astype(jnp.float32)

    # precomputed causal additive bias (finite so padded rows can never NaN)
    tri = jnp.tril(jnp.ones((T, T), dtype=bool))
    mask_bias = jnp.where(tri, 0.0, -1e30).astype(jnp.float32)

    x_pad = x if C_pad == C else jnp.pad(x, ((0, 0), (0, 0), (0, C_pad - C)))

    cfg = _chip_defaults()
    itemsize = jnp.dtype(x.dtype).itemsize
    if block_b is None:
        block_b = _pick_batch_block(
            B, T, C_pad, H,
            target_rows=cfg["target_rows"], min_steps=cfg["min_steps"],
            vmem_budget=cfg["vmem_limit"] // 2, in_itemsize=itemsize)
    assert B % block_b == 0
    grid = (B // block_b,)

    kernel = _make_attention_kernel(H, mxu_dtype)

    flops = B * (2 * T * C_pad * 3 * C_pad            # fused QKV projection
                 + 4 * H * T * T * D_pad              # scores + PV matmuls
                 + 2 * T * C_pad * C_pad)             # output projection
    transcendentals = B * H * T * T                   # softmax exp
    bytes_accessed = (2 * B * T * C_pad * itemsize
                      + wqkv.size * wqkv.dtype.itemsize + bqkv.size * 4
                      + wp.size * wp.dtype.itemsize + bp.size * 4
                      + mask_bias.size * 4)

    out = pl.pallas_call(
        kernel,
        out_shape=jax.ShapeDtypeStruct((B, T, C_pad), x.dtype),
        grid_spec=pltpu.PrefetchScalarGridSpec(
            num_scalar_prefetch=0,
            grid=grid,
            in_specs=[
                pl.BlockSpec((block_b, T, C_pad), lambda b: (b, 0, 0)),  # x slab
                pl.BlockSpec((T, T), lambda b: (0, 0)),                  # causal bias
                pl.BlockSpec((C_pad, 3 * C_pad), lambda b: (0, 0)),      # wqkv
                pl.BlockSpec((1, 3 * C_pad), lambda b: (0, 0)),          # bqkv
                pl.BlockSpec((C_pad, C_pad), lambda b: (0, 0)),          # wp
                pl.BlockSpec((1, C_pad), lambda b: (0, 0)),              # bp
            ],
            out_specs=pl.BlockSpec((block_b, T, C_pad), lambda b: (b, 0, 0)),
        ),
        compiler_params=pltpu.CompilerParams(
            dimension_semantics=("parallel",),
            vmem_limit_bytes=int(cfg["vmem_limit"]),
        ),
        cost_estimate=pl.CostEstimate(
            flops=int(flops),
            transcendentals=int(transcendentals),
            bytes_accessed=int(bytes_accessed),
        ),
    )(x_pad, mask_bias, wqkv, bqkv, wp, bp)

    return out if C_pad == C else out[..., :C]


def init_params(key, h_dim):
    """Deterministic PyTorch-Linear-style init: U(-1/sqrt(in), 1/sqrt(in))."""
    bound = 1.0 / math.sqrt(h_dim)
    keys = jax.random.split(key, 8)

    def u(k, shape):
        return jax.random.uniform(k, shape, jnp.float32, -bound, bound)

    return {
        "wq": u(keys[0], (h_dim, h_dim)), "bq": u(keys[1], (1, h_dim)),
        "wk": u(keys[2], (h_dim, h_dim)), "bk": u(keys[3], (1, h_dim)),
        "wv": u(keys[4], (h_dim, h_dim)), "bv": u(keys[5], (1, h_dim)),
        "wp": u(keys[6], (h_dim, h_dim)), "bp": u(keys[7], (1, h_dim)),
    }


def reference_attention(x, params, n_heads):
    """Pure-JAX f32 reference mirroring the PyTorch forward (eval mode)."""
    B, T, C = x.shape
    D = C // n_heads
    q = x @ params["wq"] + params["bq"]
    k = x @ params["wk"] + params["bk"]
    v = x @ params["wv"] + params["bv"]
    q = q.reshape(B, T, n_heads, D).transpose(0, 2, 1, 3)
    k = k.reshape(B, T, n_heads, D).transpose(0, 2, 1, 3)
    v = v.reshape(B, T, n_heads, D).transpose(0, 2, 1, 3)
    w = jnp.einsum("bhtd,bhsd->bhts", q, k) / math.sqrt(D)
    mask = jnp.tril(jnp.ones((T, T), bool))
    w = jnp.where(mask[None, None], w, -jnp.inf)
    p = jax.nn.softmax(w, axis=-1)
    att = jnp.einsum("bhts,bhsd->bhtd", p, v)
    att = att.transpose(0, 2, 1, 3).reshape(B, T, C)
    return att @ params["wp"] + params["bp"]


if __name__ == "__main__":
    # small shapes consistent with the module: h_dim=32, max_T >= T, n_heads=4
    B, T, C = 2, 8, 32
    n_heads = 4

    key = jax.random.PRNGKey(0)
    kx, kp = jax.random.split(key)
    x = jax.random.normal(kx, (B, T, C), jnp.float32)
    params = init_params(kp, C)

    out = masked_causal_attention(x, params, n_heads)
    out = jax.block_until_ready(out)

    ref = reference_attention(x, params, n_heads)
    assert out.shape == (B, T, C)
    # bf16 MXU inputs (f32 accumulate) + approx reciprocal -> loose tolerance
    max_err = float(jnp.max(jnp.abs(out - ref)))
    assert max_err < 5e-2, f"mismatch vs reference: max abs err {max_err}"

    print("KERNEL_OK")
</pallas_src>

<mosaic_0001>
module attributes {stable_mosaic.version = 11 : i64} {
  func.func @kernel(%arg0: i32, %arg1: memref<2x8x128xf32, #tpu.memory_space<vmem>>, %arg2: memref<8x8xf32, #tpu.memory_space<vmem>>, %arg3: memref<128x384xbf16, #tpu.memory_space<vmem>>, %arg4: memref<1x384xf32, #tpu.memory_space<vmem>>, %arg5: memref<128x128xbf16, #tpu.memory_space<vmem>>, %arg6: memref<1x128xf32, #tpu.memory_space<vmem>>, %arg7: memref<2x8x128xf32, #tpu.memory_space<vmem>>) attributes {dimension_semantics = [#tpu.dimension_semantics<parallel>], iteration_bounds = array<i64: 1>, scalar_prefetch = 0 : i64, scratch_operands = 0 : i64, tpu.core_type = #tpu.core_type<tc>, window_params = [{transform_indices = @transform_0, window_bounds = array<i64: 2, 8, 128>}, {pipeline_mode = #tpu.pipeline_mode<synchronous>, transform_indices = @transform_1, window_bounds = array<i64: 8, 8>}, {pipeline_mode = #tpu.pipeline_mode<synchronous>, transform_indices = @transform_2, window_bounds = array<i64: 128, 384>}, {pipeline_mode = #tpu.pipeline_mode<synchronous>, transform_indices = @transform_3, window_bounds = array<i64: 1, 384>}, {pipeline_mode = #tpu.pipeline_mode<synchronous>, transform_indices = @transform_4, window_bounds = array<i64: 128, 128>}, {pipeline_mode = #tpu.pipeline_mode<synchronous>, transform_indices = @transform_5, window_bounds = array<i64: 1, 128>}, {transform_indices = @transform_6, window_bounds = array<i64: 2, 8, 128>}]} {
    %c0 = arith.constant 0 : index
    %c0_0 = arith.constant 0 : index
    %c0_1 = arith.constant 0 : index
    %0 = vector.load %arg1[%c0, %c0_0, %c0_1] : memref<2x8x128xf32, #tpu.memory_space<vmem>>, vector<2x8x128xf32>
    %1 = vector.shape_cast %0 : vector<2x8x128xf32> to vector<16x128xf32>
    %2 = arith.truncf %1 : vector<16x128xf32> to vector<16x128xbf16>
    %c0_2 = arith.constant 0 : index
    %c0_3 = arith.constant 0 : index
    %3 = vector.load %arg3[%c0_2, %c0_3] : memref<128x384xbf16, #tpu.memory_space<vmem>>, vector<128x384xbf16>
    %cst = arith.constant dense<0.000000e+00> : vector<16x384xf32>
    %4 = tpu.matmul %2, %3, %cst {dimension_numbers = #tpu.dot_dimension_numbers<[1], [0], [0], [1], [0, 0, 1, 1], [], []>} : vector<16x128xbf16>, vector<128x384xbf16>, vector<16x384xf32> -> vector<16x384xf32>
    %c0_4 = arith.constant 0 : index
    %c0_5 = arith.constant 0 : index
    %5 = vector.load %arg4[%c0_4, %c0_5] : memref<1x384xf32, #tpu.memory_space<vmem>>, vector<1x384xf32>
    %6 = vector.broadcast %5 : vector<1x384xf32> to vector<16x384xf32>
    %7 = arith.addf %4, %6 : vector<16x384xf32>
    %8 = vector.shape_cast %7 : vector<16x384xf32> to vector<2x8x12x32xf32>
    %9 = tpu.transpose %8, [0, 2, 1, 3] : vector<2x8x12x32xf32> -> vector<2x12x8x32xf32>
    %10 = vector.extract_strided_slice %9 {offsets = [0, 0, 0, 0], sizes = [2, 4, 8, 32], strides = [1, 1, 1, 1]} : vector<2x12x8x32xf32> to vector<2x4x8x32xf32>
    %11 = vector.shape_cast %10 : vector<2x4x8x32xf32> to vector<8x8x32xf32>
    %12 = arith.truncf %11 : vector<8x8x32xf32> to vector<8x8x32xbf16>
    %13 = vector.extract_strided_slice %9 {offsets = [0, 4, 0, 0], sizes = [2, 4, 8, 32], strides = [1, 1, 1, 1]} : vector<2x12x8x32xf32> to vector<2x4x8x32xf32>
    %14 = vector.shape_cast %13 : vector<2x4x8x32xf32> to vector<8x8x32xf32>
    %15 = arith.truncf %14 : vector<8x8x32xf32> to vector<8x8x32xbf16>
    %16 = vector.extract_strided_slice %9 {offsets = [0, 8, 0, 0], sizes = [2, 4, 8, 32], strides = [1, 1, 1, 1]} : vector<2x12x8x32xf32> to vector<2x4x8x32xf32>
    %17 = vector.shape_cast %16 : vector<2x4x8x32xf32> to vector<8x8x32xf32>
    %18 = arith.truncf %17 : vector<8x8x32xf32> to vector<8x8x32xbf16>
    "tpu.trace_start"() <{level = 10 : i32, message = "bqd,bkd->bqk"}> : () -> ()
    %cst_6 = arith.constant dense<0.000000e+00> : vector<8x8x8xf32>
    %19 = tpu.matmul %12, %15, %cst_6 {dimension_numbers = #tpu.dot_dimension_numbers<[2], [2], [1], [1], [0, 0, 0, 1, 1, 1], [0], [0]>} : vector<8x8x32xbf16>, vector<8x8x32xbf16>, vector<8x8x8xf32> -> vector<8x8x8xf32>
    "tpu.trace_stop"() : () -> ()
    %c0_7 = arith.constant 0 : index
    %c0_8 = arith.constant 0 : index
    %20 = vector.load %arg2[%c0_7, %c0_8] : memref<8x8xf32, #tpu.memory_space<vmem>>, vector<8x8xf32>
    %21 = vector.shape_cast %20 : vector<8x8xf32> to vector<1x8x8xf32>
    %22 = vector.broadcast %21 : vector<1x8x8xf32> to vector<8x8x8xf32>
    %23 = arith.addf %19, %22 : vector<8x8x8xf32>
    %cst_9 = arith.constant dense<0xFF800000> : vector<8x8xf32>
    %24 = vector.multi_reduction <maximumf>, %23, %cst_9 [2] : vector<8x8x8xf32> to vector<8x8xf32>
    %25 = vector.shape_cast %24 : vector<8x8xf32> to vector<8x8x1xf32>
    %26 = vector.broadcast %25 : vector<8x8x1xf32> to vector<8x8x8xf32>
    %27 = arith.subf %23, %26 : vector<8x8x8xf32>
    %28 = math.exp %27 : vector<8x8x8xf32>
    %cst_10 = arith.constant dense<0.000000e+00> : vector<8x8xf32>
    %29 = vector.multi_reduction <add>, %28, %cst_10 [2] : vector<8x8x8xf32> to vector<8x8xf32>
    %30 = vector.shape_cast %29 : vector<8x8xf32> to vector<8x8x1xf32>
    %31 = arith.truncf %28 : vector<8x8x8xf32> to vector<8x8x8xbf16>
    "tpu.trace_start"() <{level = 10 : i32, message = "bqk,bkd->bqd"}> : () -> ()
    %cst_11 = arith.constant dense<0.000000e+00> : vector<8x8x32xf32>
    %32 = tpu.matmul %31, %18, %cst_11 {dimension_numbers = #tpu.dot_dimension_numbers<[2], [1], [1], [2], [0, 0, 0, 1, 1, 2], [0], [0]>} : vector<8x8x8xbf16>, vector<8x8x32xbf16>, vector<8x8x32xf32> -> vector<8x8x32xf32>
    "tpu.trace_stop"() : () -> ()
    %33 = tpu.reciprocal %30 {approx = true} : vector<8x8x1xf32> -> vector<8x8x1xf32>
    %34 = vector.broadcast %33 : vector<8x8x1xf32> to vector<8x8x32xf32>
    %35 = arith.mulf %32, %34 : vector<8x8x32xf32>
    %36 = vector.shape_cast %35 : vector<8x8x32xf32> to vector<2x4x8x32xf32>
    %37 = tpu.transpose %36, [0, 2, 1, 3] : vector<2x4x8x32xf32> -> vector<2x8x4x32xf32>
    %38 = vector.shape_cast %37 : vector<2x8x4x32xf32> to vector<16x128xf32>
    %39 = arith.truncf %38 : vector<16x128xf32> to vector<16x128xbf16>
    %c0_12 = arith.constant 0 : index
    %c0_13 = arith.constant 0 : index
    %40 = vector.load %arg5[%c0_12, %c0_13] : memref<128x128xbf16, #tpu.memory_space<vmem>>, vector<128x128xbf16>
    %cst_14 = arith.constant dense<0.000000e+00> : vector<16x128xf32>
    %41 = tpu.matmul %39, %40, %cst_14 {dimension_numbers = #tpu.dot_dimension_numbers<[1], [0], [0], [1], [0, 0, 1, 1], [], []>} : vector<16x128xbf16>, vector<128x128xbf16>, vector<16x128xf32> -> vector<16x128xf32>
    %c0_15 = arith.constant 0 : index
    %c0_16 = arith.constant 0 : index
    %42 = vector.load %arg6[%c0_15, %c0_16] : memref<1x128xf32, #tpu.memory_space<vmem>>, vector<1x128xf32>
    %43 = vector.broadcast %42 : vector<1x128xf32> to vector<16x128xf32>
    %44 = arith.addf %41, %43 : vector<16x128xf32>
    %45 = vector.shape_cast %44 : vector<16x128xf32> to vector<2x8x128xf32>
    %c0_17 = arith.constant 0 : index
    %c0_18 = arith.constant 0 : index
    %c0_19 = arith.constant 0 : index
    %46 = vector.load %arg7[%c0_17, %c0_18, %c0_19] : memref<2x8x128xf32, #tpu.memory_space<vmem>>, vector<2x8x128xf32>
    tpu.vector_store %arg7[%c0_17, %c0_18, %c0_19], %45 {strides = array<i32>} : memref<2x8x128xf32, #tpu.memory_space<vmem>>, vector<2x8x128xf32>,
    return
  }
  func.func @transform_0(%arg0: i32) -> (i32, i32, i32) {
    %c0_i32 = arith.constant 0 : i32
    %c0_i32_0 = arith.constant 0 : i32
    %c0_i32_1 = arith.constant 0 : i32
    return %arg0, %c0_i32, %c0_i32_0 : i32, i32, i32
  }
  func.func @transform_1(%arg0: i32) -> (i32, i32) {
    %c0_i32 = arith.constant 0 : i32
    %c0_i32_0 = arith.constant 0 : i32
    %c0_i32_1 = arith.constant 0 : i32
    return %c0_i32, %c0_i32_0 : i32, i32
  }
  func.func @transform_2(%arg0: i32) -> (i32, i32) {
    %c0_i32 = arith.constant 0 : i32
    %c0_i32_0 = arith.constant 0 : i32
    %c0_i32_1 = arith.constant 0 : i32
    return %c0_i32, %c0_i32_0 : i32, i32
  }
  func.func @transform_3(%arg0: i32) -> (i32, i32) {
    %c0_i32 = arith.constant 0 : i32
    %c0_i32_0 = arith.constant 0 : i32
    %c0_i32_1 = arith.constant 0 : i32
    return %c0_i32, %c0_i32_0 : i32, i32
  }
  func.func @transform_4(%arg0: i32) -> (i32, i32) {
    %c0_i32 = arith.constant 0 : i32
    %c0_i32_0 = arith.constant 0 : i32
    %c0_i32_1 = arith.constant 0 : i32
    return %c0_i32, %c0_i32_0 : i32, i32
  }
  func.func @transform_5(%arg0: i32) -> (i32, i32) {
    %c0_i32 = arith.constant 0 : i32
    %c0_i32_0 = arith.constant 0 : i32
    %c0_i32_1 = arith.constant 0 : i32
    return %c0_i32, %c0_i32_0 : i32, i32
  }
  func.func @transform_6(%arg0: i32) -> (i32, i32, i32) {
    %c0_i32 = arith.constant 0 : i32
    %c0_i32_0 = arith.constant 0 : i32
    %c0_i32_1 = arith.constant 0 : i32
    return %arg0, %c0_i32, %c0_i32_0 : i32, i32, i32
  }
}

</mosaic_0001>

<bundles_post_ra>
// kernel: tpu_custom_call.1
= control target key start
LH: loop header
LB: loop body
LE: loop exit
PB: predicated region body
PF: predicated region fallthrough
CT: control target
= control target key end

     0   :  { %11 = vsyncpa [#allocation3], 0  ;;  %s2922_s0 = inlined_call_operand.hbm [shape: f32[2,8,128], index: 0, kind: input, shape index: {}]   ;;  %s2923_s1 = inlined_call_operand.hbm [shape: f32[8,8], index: 1, kind: input, shape index: {}]   ;;  %s2924_s2 = inlined_call_operand.hbm [shape: bf16[128,384], index: 2, kind: input, shape index: {}]   ;;  %s2925_s3 = inlined_call_operand.hbm [shape: f32[1,384], index: 3, kind: input, shape index: {}]   ;;  %s2926_s4 = inlined_call_operand.hbm [shape: bf16[128,128], index: 4, kind: input, shape index: {}]   ;;  %s2927_s5 = inlined_call_operand.vmem [shape: f32[1,128], index: 5, kind: input, shape index: {}]   ;;  %s2928_s6 = inlined_call_operand.hbm [shape: f32[2,8,128], index: 6, kind: output, shape index: {}]  }
   0x1   :  { %12 = vsyncpa [#allocation6], 0 }
   0x2   :  { %13 = vsyncpa [#allocation9], 0  ;;  %s33_s23 = sshll.u32 %s2923_s1, 4  ;;  %s34_s23 = int_to_ptr.hbm [resolvable:$true] %s33_s23 }
   0x3   :  { %14 = vsyncpa [#allocation4], 0  ;;  %s2264_s24 = smov [#allocation5]   ;;  %s57_s28 = sshll.u32 %s2925_s3, 4  ;;  %s58_s28 = int_to_ptr.hbm [resolvable:$true] %s57_s28 }
   0x4   :  { %s35_s25 = sshll.u32 %s2264_s24, 4  ;;  %s2265_s29 = smov [#allocation8]   ;;  %s36_s25 = int_to_ptr.vmem [resolvable:$true] %s35_s25 }
   0x5   :  { %38 = dma.hbm_to_vmem [thread:$0]  %s34_s23, 128, %s36_s25, [#allocation6]  }
   0x6   :  { %s59_s30 = sshll.u32 %s2265_s29, 4  ;;  %s19_s9 = sshll.u32 %s2922_s0, 4  ;;  %s60_s30 = int_to_ptr.vmem [resolvable:$true] %s59_s30  ;;  %s20_s9 = int_to_ptr.hbm [resolvable:$true] %s19_s9 }
   0x7   :  { %62 = dma.hbm_to_vmem [thread:$0]  %s58_s28, 48, %s60_s30, [#allocation9]  }
   0x8   :  { %s2266_s1 = smov [#allocation2]   ;;  %s43_s13 = sshll.u32 %s2924_s2, 4  ;;  %s44_s13 = int_to_ptr.hbm [resolvable:$true] %s43_s13 }
   0x9   :  { %s21_s10 = sshll.u32 %s2266_s1, 4  ;;  %s2267_s14 = smov 128   ;;  %s22_s10 = int_to_ptr.vmem [resolvable:$true] %s21_s10 }
   0xa   :  { %s2268_s3 = smov 8   ;;  %s2269_s15 = smov [#allocation7]  }
   0xb   :  { %27 = dma.hbm_to_vmem [thread:$0]  %s20_s9, 256, %s22_s10, [#allocation3], %s2267_s14, %s2267_s14, %s2268_s3  }
   0xc   :  { %s45_s16 = sshll.u32 %s2269_s15, 4  ;;  %s2270_s0 = smov 192   ;;  %s46_s16 = int_to_ptr.vmem [resolvable:$true] %s45_s16 }
   0xd   :  { %s2271_s17 = smov 12   ;;  %s67_s20 = sshll.u32 %s2926_s4, 4  ;;  %s68_s20 = int_to_ptr.hbm [resolvable:$true] %s67_s20 }
   0xe   :  { %51 = dma.hbm_to_vmem [thread:$0]  %s44_s13, 3072, %s46_s16, [#allocation6], %s2270_s0, %s2270_s0, %s2271_s17  }
   0xf   :  { %s2272_s21 = smov [#allocation10]   ;;  %s2273_s22 = smov 64  }
  0x10   :  { %s69_s2 = sshll.u32 %s2272_s21, 4  ;;  %s2274_s23 = smov 4   ;;  %s70_s2 = int_to_ptr.vmem [resolvable:$true] %s69_s2 }
  0x11   :  { %75 = dma.hbm_to_vmem [thread:$0]  %s68_s20, 1024, %s70_s2, [#allocation9], %s2273_s22, %s2273_s22, %s2274_s23  }
  0x12   :  { %2256 = dma.done.wait [#allocation3], 256  }
  0x13   :  { %2257 = vsyncadd [#allocation3], 4294967040 }
  0x14   :  { %2258 = dma.done.wait [#allocation6], 3200  }
  0x15   :  { %2259 = vsyncadd [#allocation6], 4294964096 }
  0x16   :  { %2260 = dma.done.wait [#allocation9], 1072  }
  0x17   :  { %2261 = vsyncadd [#allocation9], 4294966224  ;;  %v1913_v0 = vld [vmem:[#allocation7 + $0xa8] sm:$0xf]  ;;  %v1993_v1 = vld [vmem:[#allocation7 + $0xb0] sm:$0xf0] }
  0x18   :  { %v1992_v2 = vld [vmem:[#allocation7 + $0xac] sm:$0xf]  ;;  %v1914_v3 = vor.u32 %v1993_v1, %v1913_v0  ;;  %v1915_v4 = vld [vmem:[#allocation7 + $0xb4] sm:$0xf0]  ;;  %v1901_v5 = vld [vmem:[#allocation7 + $0x90] sm:$0xf] }
  0x19   :  { %v1990_v6 = vld [vmem:[#allocation7 + $0x98] sm:$0xf0]  ;;  %v1918_v7 = vor.u32 %v1992_v2, %v1915_v4  ;;  %v1989_v8 = vld [vmem:[#allocation7 + $0x94] sm:$0xf]  ;;  %v1903_v9 = vld [vmem:[#allocation7 + $0x9c] sm:$0xf0] }
  0x1a   :  { %270 = vmatpush.bf16.msra.mxu0 %v1914_v3  ;;  %v1902_v10 = vor.u32 %v1990_v6, %v1901_v5  ;;  %v1906_v11 = vor.u32 %v1989_v8, %v1903_v9  ;;  %v1889_v12 = vld [vmem:[#allocation7 + $0x78] sm:$0xf]  ;;  %v1987_v13 = vld [vmem:[#allocation7 + $0x80] sm:$0xf0]  ;;  %v1986_v14 = vld [vmem:[#allocation7 + $0x7c] sm:$0xf] }
  0x1b   :  { %284 = vmatpush.bf16.msra.mxu1 %v1918_v7  ;;  %v1891_v15 = vld [vmem:[#allocation7 + $0x84] sm:$0xf0]  ;;  %v1890_v16 = vor.u32 %v1987_v13, %v1889_v12  ;;  %v1877_v18 = vld [vmem:[#allocation7 + $0x60] sm:$0xf]  ;;  %v1984_v19 = vld [vmem:[#allocation7 + $0x68] sm:$0xf0] }
  0x1c   :  { %v1894_v17 = vor.u32 %v1986_v14, %v1891_v15  ;;  %v1983_v20 = vld [vmem:[#allocation7 + $0x64] sm:$0xf]  ;;  %v1879_v21 = vld [vmem:[#allocation7 + $0x6c] sm:$0xf0]  ;;  %v1878_v22 = vor.u32 %v1984_v19, %v1877_v18  ;;  %v1865_v23 = vld [vmem:[#allocation7 + $0x48] sm:$0xf] }
  0x1d   :  { %v1921_v24 = vld [vmem:[#allocation7 + $0xb0] sm:$0xf]  ;;  %v1994_v25 = vld [vmem:[#allocation7 + $0xb8] sm:$0xf0]  ;;  %v1882_v26 = vor.u32 %v1983_v20, %v1879_v21  ;;  %v1981_v27 = vld [vmem:[#allocation7 + $0x50] sm:$0xf0] }
  0x1e   :  { %271 = vmatpush.bf16.msra.mxu0 %v1902_v10  ;;  %v1922_v28 = vor.u32 %v1994_v25, %v1921_v24  ;;  %v1909_v29 = vld [vmem:[#allocation7 + $0x98] sm:$0xf]  ;;  %v1991_v30 = vld [vmem:[#allocation7 + $0xa0] sm:$0xf0]  ;;  %v1980_v31 = vld [vmem:[#allocation7 + $0x4c] sm:$0xf]  ;;  %v1866_v34 = vor.u32 %v1981_v27, %v1865_v23 }
  0x1f   :  { %285 = vmatpush.bf16.msra.mxu1 %v1906_v11  ;;  %v1867_v32 = vld [vmem:[#allocation7 + $0x54] sm:$0xf0]  ;;  %v1910_v33 = vor.u32 %v1991_v30, %v1909_v29  ;;  %v1897_v35 = vld [vmem:[#allocation7 + $0x80] sm:$0xf]  ;;  %v1988_v36 = vld [vmem:[#allocation7 + $0x88] sm:$0xf0] }
  0x20   :  { %298 = vmatpush.bf16.msra.mxu2 %v1922_v28  ;;  %v1870_v37 = vor.u32 %v1980_v31, %v1867_v32  ;;  %v1853_v38 = vld [vmem:[#allocation7 + $0x30] sm:$0xf]  ;;  %v1978_v39 = vld [vmem:[#allocation7 + $0x38] sm:$0xf0]  ;;  %v1977_v40 = vld [vmem:[#allocation7 + $0x34] sm:$0xf]  ;;  %v1898_v42 = vor.u32 %v1988_v36, %v1897_v35 }
  0x21   :  { %v1855_v41 = vld [vmem:[#allocation7 + $0x3c] sm:$0xf0]  ;;  %v1854_v43 = vor.u32 %v1978_v39, %v1853_v38  ;;  %v1885_v44 = vld [vmem:[#allocation7 + $0x68] sm:$0xf]  ;;  %v1985_v45 = vld [vmem:[#allocation7 + $0x70] sm:$0xf0] }
  0x22   :  { %272 = vmatpush.bf16.msra.mxu0 %v1890_v16  ;;  %v1858_v46 = vor.u32 %v1977_v40, %v1855_v41  ;;  %v1841_v47 = vld [vmem:[#allocation7 + $0x18] sm:$0xf]  ;;  %v1975_v48 = vld [vmem:[#allocation7 + $0x20] sm:$0xf0]  ;;  %v1974_v49 = vld [vmem:[#allocation7 + $0x1c] sm:$0xf]  ;;  %v1886_v51 = vor.u32 %v1985_v45, %v1885_v44 }
  0x23   :  { %286 = vmatpush.bf16.msra.mxu1 %v1894_v17  ;;  %v1843_v50 = vld [vmem:[#allocation7 + $0x24] sm:$0xf0]  ;;  %v1842_v52 = vor.u32 %v1975_v48, %v1841_v47  ;;  %v1873_v53 = vld [vmem:[#allocation7 + $0x50] sm:$0xf]  ;;  %v1982_v54 = vld [vmem:[#allocation7 + $0x58] sm:$0xf0] }
  0x24   :  { %299 = vmatpush.bf16.msra.mxu2 %v1910_v33  ;;  %v1846_v55 = vor.u32 %v1974_v49, %v1843_v50  ;;  %v1829_v56 = vld [vmem:[#allocation7] sm:$0xf]  ;;  %v1972_v57 = vld [vmem:[#allocation7 + $0x8] sm:$0xf0]  ;;  %v1971_v58 = vld [vmem:[#allocation7 + $0x4] sm:$0xf]  ;;  %v1874_v61 = vor.u32 %v1982_v54, %v1873_v53 }
  0x25   :  { %v1831_v59 = vld [vmem:[#allocation7 + $0xc] sm:$0xf0]  ;;  %v99_v60 = vld [vmem:[#allocation2] sm:$0xff]  ;;  %v1830_v62 = vor.u32 %v1972_v57, %v1829_v56  ;;  %v1861_v0 = vld [vmem:[#allocation7 + $0x38] sm:$0xf]  ;;  %s2275_s4 = smov 96  }
  0x26   :  { %273 = vmatpush.bf16.msra.mxu0 %v1878_v22  ;;  %v100_v63 = vld [vmem:[#allocation2 + $0x8] sm:$0xff]  ;;  %v1979_v1 = vld [vmem:[#allocation7 + $0x40] sm:$0xf0]  ;;  %v1834_v2 = vor.u32 %v1971_v58, %v1831_v59  ;;  %v1849_v5 = vld [vmem:[#allocation7 + $0x20] sm:$0xf]  ;;  %s2276_s24 = smov 32  }
  0x27   :  { %287 = vmatpush.bf16.msra.mxu1 %v1882_v26  ;;  %v101_v3 = vpack.c.bf16 %v100_v63, %v99_v60  ;;  %v1862_v4 = vor.u32 %v1979_v1, %v1861_v0  ;;  %v1976_v6 = vld [vmem:[#allocation7 + $0x28] sm:$0xf0]  ;;  %v1837_v8 = vld [vmem:[#allocation7 + $0x8] sm:$0xf]  ;;  %v1973_v9 = vld [vmem:[#allocation7 + $0x10] sm:$0xf0] }
  0x28   :  { %300 = vmatpush.bf16.msra.mxu2 %v1898_v42  ;;  %v1850_v7 = vor.u32 %v1976_v6, %v1849_v5  ;;  %v1838_v10 = vor.u32 %v1973_v9, %v1837_v8  ;;  %v2335_v11 = vld [vmem:[#allocation8] sm:$0x7]  ;;  %v2277_v28 = vmov 1983009808   ;;  %vm373_vm0 = vcmask 1047556   ;;  %s2279_s27 = smov [#allocation11]  }
  0x29   :  { %v136_v12 = vperm.slane %v2335_v11, 0  ;;  %v137_v13 = vperm.slane %v2335_v11, 1  ;;  %v378_v29 = vunpack.c.l.s4 %v2277_v28  ;;  %v138_v0 = vperm.slane %v2335_v11, 2  ;;  %s1810_s28 = sshll.u32 %s2279_s27, 4  ;;  %s1812_s7 = sshll.u32 %s2928_s6, 4  ;;  %s1811_s28 = int_to_ptr.vmem [resolvable:$true] %s1810_s28  ;;  %s1813_s7 = int_to_ptr.hbm [resolvable:$true] %s1812_s7 }
  0x2a   :  { %274 = vmatpush.bf16.msra.mxu0 %v1866_v34  ;;  %vm1066_vm1 = vcmask 261120   ;;  %vm1303_vm2 = vcmask 1043456   ;;  %vm1219_vm3 = vcmask 64512   ;;  %vm1715_vm4 = vcmask 523264  }
  0x2b   :  { %288 = vmatpush.bf16.msra.mxu1 %v1870_v37  ;;  %v2350_v34 = vunpack.c.0.s8 %v378_v29  ;;  %vm1718_vm5 = vcmask 785408  }
  0x2c   :  { %301 = vmatpush.bf16.msra.mxu2 %v1886_v51 }
  0x2e   :  { %275 = vmatpush.bf16.msra.mxu0 %v1854_v43  ;;  %v2278_v43 = vmov 1934713408  }
  0x2f   :  { %289 = vmatpush.bf16.msra.mxu1 %v1858_v46  ;;  %v426_v44 = vunpack.c.l.s4 %v2278_v43 }
  0x30   :  { %302 = vmatpush.bf16.msra.mxu2 %v1874_v61 }
  0x31   :  { %v2375_v60 = vunpack.c.0.s8 %v426_v44 }
  0x32   :  { %276 = vmatpush.bf16.msra.mxu0 %v1842_v52 }
  0x33   :  { %290 = vmatpush.bf16.msra.mxu1 %v1846_v55 }
  0x34   :  { %303 = vmatpush.bf16.msra.mxu2 %v1862_v4 }
  0x36   :  { %277 = vmatpush.bf16.msra.mxu0 %v1830_v62 }
  0x37   :  { %291 = vmatpush.bf16.msra.mxu1 %v1834_v2 }
  0x38   :  { %304 = vmatpush.bf16.msra.mxu2 %v1850_v7 }
  0x39   :  { %278 = vmatmul.bf16.vlgmr.msra.gmra.mxu0 %v101_v3 }
  0x3a   :  { %292 = vmatmul.bf16.vlgmr.msra.gmra.mxu1 %v101_v3 }
  0x3c   :  { %305 = vmatpush.bf16.msra.mxu2 %v1838_v10 }
  0x3f   :  { %306 = vmatmul.bf16.vlgmr.msra.gmra.mxu2 %v101_v3 }
  0xb6   :  { %v279_v14 = vpop.f32.mrf.mxu0 }
  0xb7   :  { %v2339_v15 = vadd.f32 %v279_v14, %v136_v12  ;;  %v293_v16 = vpop.f32.mrf.mxu1 }
  0xb8   :  { %v294_v17 = vadd.f32 %v293_v16, %v137_v13 }
  0xb9   :  { %v375_v41 = vrot.slane %v2339_v15, 4 }
  0xba   :  { %v2029_v18 = vpack.i.bf16 %v294_v17, %v2339_v15  ;;  %v399_v46 = vrot.slane %v294_v17, 4 }
  0xbc   :  { %2030 = vrot.lane.b32.xlu1 %v2029_v18, %s2273_s22  ;;  %2020 = vrot.lane.b32.xlu0 %v2029_v18, %s2275_s4 }
  0xbe   :  { %v281_v19 = vpop.f32.mrf.mxu0 }
  0xbf   :  { %v282_v20 = vadd.f32 %v281_v19, %v136_v12  ;;  %v295_v21 = vpop.f32.mrf.mxu1 }
  0xc0   :  { %v296_v22 = vadd.f32 %v295_v21, %v137_v13 }
  0xc1   :  { %v543_v33 = vrot.slane %v282_v20, 4 }
  0xc2   :  { %v2039_v23 = vpack.i.bf16 %v296_v22, %v282_v20  ;;  %v567_v32 = vrot.slane %v296_v22, 4  ;;  %v307_v38 = vpop.f32.mrf.mxu2 }
  0xc3   :  { %v2390_v8 = vadd.f32 %v307_v38, %v138_v0 }
  0xc4   :  { %2040 = vrot.lane.b32.xlu2 %v2039_v23, %s2276_s24  ;;  %2035 = vrot.lane.b32.xlu1 %v2039_v23, %s2275_s4 }
  0xc5   :  { %2025 = vrot.lane.b32.xlu0 %v2029_v18, %s2276_s24 }
  0xca   :  { %v309_v9 = vpop.f32.mrf.mxu2 }
  0xcb   :  { %v2397_v14 = vadd.f32 %v309_v9, %v138_v0 }
  0xcc   :  { %2045 = vrot.lane.b32.xlu2 %v2039_v23, %s2273_s22 }
 0x11e   :  { %v2348_v24 = vpop.permute.xlu2 %2040 }
 0x11f   :  { %v2043_v45 = vunpack.i.h.bf16 %v2348_v24  ;;  %v2042_v49 = vunpack.i.l.bf16 %v2348_v24 }
 0x121   :  { %v577_v61 = vrot.slane %v2043_v45, 4  ;;  %v553_v1 = vrot.slane %v2042_v49, 4 }
 0x126   :  { %v2046_v25 = vpop.permute.xlu2 %2045 }
 0x127   :  { %v2048_v26 = vunpack.i.h.bf16 %v2046_v25  ;;  %v2047_v27 = vunpack.i.l.bf16 %v2046_v25 }
 0x129   :  { %v565_v30 = vrot.slane %v2048_v26, 4  ;;  %v541_v31 = vrot.slane %v2047_v27, 4  ;;  %v568_v36 = vsel %vm373_vm0, %v2048_v26, %v567_v32  ;;  %v544_v37 = vsel %vm373_vm0, %v2047_v27, %v543_v33 }
 0x12a   :  { %v2363_v51 = vperm.slane %v568_v36, %v2350_v34  ;;  %v2366_v52 = vperm.slane %v544_v37, %v2350_v34 }
 0x12b   :  { %v566_v35 = vsel %vm373_vm0, %v565_v30, %v296_v22  ;;  %v542_v39 = vsel %vm373_vm0, %v541_v31, %v282_v20  ;;  %v2405_v22 = vpack.i.bf16 %v2397_v14, %v2390_v8 }
 0x12c   :  { %v572_v50 = vperm.slane %v566_v35, %v2350_v34  ;;  %v2369_v53 = vperm.slane %v542_v39, %v2350_v34  ;;  %v627_v2 = vrot.slane %v2363_v51, 4  ;;  %v603_v3 = vrot.slane %v2366_v52, 4 }
 0x12d   :  { %2055 = vrot.lane.b32.xlu1 %v2405_v22, %s2273_s22  ;;  %2050 = vrot.lane.b32.xlu0 %v2405_v22, %s2275_s4 }
 0x12e   :  { %v2031_v40 = vpop.permute.xlu1 %2030  ;;  %v2357_v42 = vpop.permute.xlu0 %2020  ;;  %v615_v5 = vrot.slane %v572_v50, 4  ;;  %v591_v6 = vrot.slane %v2369_v53, 4  ;;  %2060 = vrot.lane.b32.xlu2 %v2405_v22, %s2276_s24 }
 0x12f   :  { %v2033_v47 = vunpack.i.h.bf16 %v2031_v40  ;;  %v2032_v48 = vunpack.i.l.bf16 %v2031_v40  ;;  %v2023_v58 = vunpack.i.h.bf16 %v2357_v42  ;;  %v2022_v59 = vunpack.i.l.bf16 %v2357_v42 }
 0x131   :  { %v397_v54 = vrot.slane %v2033_v47, 4  ;;  %v400_v55 = vsel %vm373_vm0, %v2033_v47, %v399_v46  ;;  %v372_v56 = vrot.slane %v2032_v48, 4  ;;  %v376_v57 = vsel %vm373_vm0, %v2032_v48, %v375_v41 }
 0x132   :  { %v2379_v63 = vperm.slane %v400_v55, %v2350_v34  ;;  %v2388_v7 = vperm.slane %v376_v57, %v2350_v34  ;;  %v411_v11 = vrot.slane %v2023_v58, 4  ;;  %v387_v12 = vrot.slane %v2022_v59, 4 }
 0x133   :  { %v398_v62 = vsel %vm373_vm0, %v397_v54, %v294_v17  ;;  %v374_v4 = vsel %vm373_vm0, %v372_v56, %v2339_v15 }
 0x134   :  { %v2393_v10 = vperm.slane %v398_v62, %v2350_v34  ;;  %v459_v15 = vrot.slane %v2379_v63, 4  ;;  %v2401_v16 = vperm.slane %v374_v4, %v2350_v34  ;;  %v435_v28 = vrot.slane %v2388_v7, 4 }
 0x136   :  { %v2036_v13 = vpop.permute.xlu1 %2035  ;;  %v447_v27 = vrot.slane %v2393_v10, 4  ;;  %v423_v0 = vrot.slane %v2401_v16, 4 }
 0x137   :  { %v2038_v17 = vunpack.i.h.bf16 %v2036_v13  ;;  %v2037_v18 = vunpack.i.l.bf16 %v2036_v13  ;;  %v2026_v19 = vpop.permute.xlu0 %2025 }
 0x138   :  { %v2028_v20 = vunpack.i.h.bf16 %v2026_v19  ;;  %v2027_v21 = vunpack.i.l.bf16 %v2026_v19 }
 0x139   :  { %v578_v23 = vsel %vm373_vm0, %v577_v61, %v2038_v17  ;;  %v579_v24 = vrot.slane %v2038_v17, 4  ;;  %v554_v25 = vsel %vm373_vm0, %v553_v1, %v2037_v18  ;;  %v555_v26 = vrot.slane %v2037_v18, 4 }
 0x13a   :  { %v584_v29 = vperm.slane %v578_v23, %v2350_v34  ;;  %v560_v30 = vperm.slane %v554_v25, %v2350_v34  ;;  %v409_v33 = vrot.slane %v2028_v20, 4  ;;  %v385_v35 = vrot.slane %v2027_v21, 4 }
 0x13b   :  { %v580_v31 = vsel %vm373_vm0, %v2043_v45, %v579_v24  ;;  %v556_v32 = vsel %vm373_vm0, %v2042_v49, %v555_v26  ;;  %v388_v44 = vsel %vm373_vm0, %v2027_v21, %v387_v12 }
 0x13c   :  { %v588_v36 = vperm.slane %v580_v31, %v2350_v34  ;;  %v613_v37 = vrot.slane %v584_v29, 4  ;;  %v616_v38 = vsel %vm373_vm0, %v584_v29, %v615_v5  ;;  %v564_v39 = vperm.slane %v556_v32, %v2350_v34 }
 0x13d   :  { %v2423_v40 = vperm.slane %v616_v38, %v2375_v60  ;;  %v589_v41 = vrot.slane %v560_v30, 4  ;;  %v592_v43 = vsel %vm373_vm0, %v560_v30, %v591_v6  ;;  %v386_v56 = vsel %vm373_vm0, %v385_v35, %v2022_v59 }
 0x13e   :  { %v614_v45 = vsel %vm373_vm0, %v613_v37, %v572_v50  ;;  %v625_v46 = vrot.slane %v588_v36, 4  ;;  %v628_v47 = vsel %vm373_vm0, %v588_v36, %v627_v2  ;;  %v2430_v48 = vperm.slane %v592_v43, %v2375_v60 }
 0x13f   :  { %v2433_v49 = vperm.slane %v614_v45, %v2375_v60  ;;  %v2436_v54 = vperm.slane %v628_v47, %v2375_v60  ;;  %v590_v55 = vsel %vm373_vm0, %v589_v41, %v2369_v53  ;;  %v601_v61 = vrot.slane %v564_v39, 4 }
 0x140   :  { %v626_v50 = vsel %vm373_vm0, %v625_v46, %v2363_v51  ;;  %v2444_v57 = vperm.slane %v590_v55, %v2375_v60  ;;  %v604_v62 = vsel %vm373_vm0, %v564_v39, %v603_v3  ;;  %v412_v53 = vsel %vm373_vm0, %v2028_v20, %v411_v11 }
 0x141   :  { %v2449_v1 = vperm.slane %v626_v50, %v2375_v60  ;;  %v2452_v2 = vperm.slane %v604_v62, %v2375_v60  ;;  %v602_v59 = vsel %vm373_vm0, %v601_v61, %v2366_v52  ;;  %v643_v4 = vrot.slane %v2430_v48, 4 }
 0x142   :  { %v639_v51 = vrot.slane %v2444_v57, 4  ;;  %v392_v5 = vperm.slane %v386_v56, %v2350_v34  ;;  %v641_v3 = vrot.slane %v2423_v40, 4  ;;  %v2462_v6 = vperm.slane %v602_v59, %v2375_v60 }
 0x143   :  { %v651_v9 = vrot.slane %v2452_v2, 4  ;;  %v396_v12 = vperm.slane %v388_v44, %v2350_v34  ;;  %v637_v11 = vrot.slane %v2433_v49, 4  ;;  %v645_v13 = vrot.slane %v2449_v1, 4 }
 0x144   :  { %v649_v52 = vrot.slane %v2436_v54, 4  ;;  %v410_v17 = vsel %vm373_vm0, %v409_v33, %v2023_v58  ;;  %v2474_v18 = vsel %vm373_vm0, %v2433_v49, %v639_v51  ;;  %v2478_v19 = vsel %vm373_vm0, %v2423_v40, %v643_v4 }
 0x145   :  { %v416_v20 = vperm.slane %v410_v17, %v2350_v34  ;;  %v420_v21 = vperm.slane %v412_v53, %v2350_v34  ;;  %v647_v23 = vrot.slane %v2462_v6, 4  ;;  %v421_v24 = vrot.slane %v392_v5, 4 }
 0x146   :  { %v424_v25 = vsel %vm373_vm0, %v392_v5, %v423_v0  ;;  %v433_v42 = vrot.slane %v396_v12, 4  ;;  %v2486_v58 = vsel %vm373_vm0, %v2436_v54, %v651_v9  ;;  %v436_v29 = vsel %vm373_vm0, %v396_v12, %v435_v28 }
 0x147   :  { %v432_v26 = vperm.slane %v424_v25, %v2375_v60  ;;  %v445_v30 = vrot.slane %v416_v20, 4  ;;  %v422_v31 = vsel %vm373_vm0, %v421_v24, %v2401_v16  ;;  %v444_v33 = vperm.slane %v436_v29, %v2375_v60 }
 0x148   :  { %v434_v32 = vsel %vm373_vm0, %v433_v42, %v2388_v7  ;;  %v448_v35 = vsel %vm373_vm0, %v416_v20, %v447_v27  ;;  %v428_v36 = vperm.slane %v422_v31, %v2375_v60  ;;  %v457_v41 = vrot.slane %v420_v21, 4 }
 0x149   :  { %v440_v37 = vperm.slane %v434_v32, %v2375_v60  ;;  %v446_v38 = vsel %vm373_vm0, %v445_v30, %v2393_v10  ;;  %v456_v28 = vperm.slane %v448_v35, %v2375_v60  ;;  %v460_v7 = vsel %vm373_vm0, %v420_v21, %v459_v15 }
 0x14a   :  { %v452_v39 = vperm.slane %v446_v38, %v2375_v60  ;;  %v475_v16 = vrot.slane %v432_v26, 4  ;;  %v468_v43 = vperm.slane %v460_v7, %v2375_v60  ;;  %v471_v27 = vrot.slane %v428_v36, 4 }
 0x14b   :  { %v473_v44 = vrot.slane %v456_v28, 4  ;;  %v479_v45 = vrot.slane %v440_v37, 4  ;;  %v458_v46 = vsel %vm373_vm0, %v457_v41, %v2379_v63  ;;  %v483_v10 = vrot.slane %v444_v33, 4 }
 0x14c   :  { %v469_v47 = vrot.slane %v452_v39, 4  ;;  %v2509_v49 = vsel %vm373_vm0, %v456_v28, %v475_v16  ;;  %v464_v55 = vperm.slane %v458_v46, %v2375_v60  ;;  %v481_v56 = vrot.slane %v468_v43, 4 }
 0x14d   :  { %v2513_v50 = vsel %vm373_vm0, %v452_v39, %v471_v27  ;;  %v2516_v15 = vsel %vm373_vm0, %v473_v44, %v432_v26  ;;  %v2520_v61 = vsel %vm373_vm0, %v2449_v1, %v647_v23  ;;  %v887_v63 = vrot.slane %v2478_v19, 4 }
 0x14e   :  { %v2524_v62 = vsel %vm373_vm0, %v468_v43, %v483_v10  ;;  %v2527_v0 = vsel %vm373_vm0, %v469_v47, %v428_v36  ;;  %v477_v53 = vrot.slane %v464_v55, 4  ;;  %v2530_v59 = vsel %vm373_vm0, %v464_v55, %v479_v45 }
 0x14f   :  { %v2533_v51 = vsel %vm373_vm0, %v481_v56, %v444_v33  ;;  %v709_v4 = vrot.slane %v2516_v15, 4  ;;  %v747_v5 = vrot.slane %v2530_v59, 4  ;;  %v711_v9 = vrot.slane %v2527_v0, 4 }
 0x150   :  { %v721_v12 = vrot.slane %v2509_v49, 4  ;;  %v723_v17 = vrot.slane %v2513_v50, 4  ;;  %v2541_v20 = vsel %vm373_vm0, %v477_v53, %v440_v37  ;;  %v745_v21 = vrot.slane %v2524_v62, 4 }
 0x151   :  { %v733_v23 = vrot.slane %v2533_v51, 4  ;;  %v2547_v24 = vsel %vm373_vm0, %v637_v11, %v2444_v57  ;;  %v712_v25 = vsel %vm373_vm0, %v2516_v15, %v711_v9  ;;  %v735_v26 = vrot.slane %v2541_v20, 4 }
 0x152   :  { %v724_v42 = vsel %vm373_vm0, %v2509_v49, %v723_v17  ;;  %v748_v29 = vsel %vm373_vm0, %v2524_v62, %v747_v5  ;;  %v720_v30 = vperm.slane %v712_v25, %v2350_v34  ;;  %v2563_v57 = vsel %vm373_vm0, %v645_v13, %v2462_v6 }
 0x153   :  { %v732_v31 = vperm.slane %v724_v42, %v2350_v34  ;;  %v756_v32 = vperm.slane %v748_v29, %v2350_v34  ;;  %v736_v11 = vsel %vm373_vm0, %v2533_v51, %v735_v26  ;;  %v2571_v33 = vsel %vm373_vm0, %v641_v3, %v2430_v48 }
 0x154   :  { %v877_v35 = vrot.slane %v2547_v24, 4  ;;  %v744_v36 = vperm.slane %v736_v11, %v2350_v34  ;;  %v771_v38 = vrot.slane %v720_v30, 4  ;;  %v2579_v6 = vsel %vm373_vm0, %v649_v52, %v2452_v2 }
 0x155   :  { %v769_v37 = vrot.slane %v732_v31, 4  ;;  %v793_v1 = vrot.slane %v756_v32, 4  ;;  %v889_v40 = vrot.slane %v2474_v18, 4  ;;  %v901_v48 = vrot.slane %v2563_v57, 4 }
 0x156   :  { %v878_v13 = vsel %vm373_vm0, %v2571_v33, %v877_v35  ;;  %v772_v39 = vsel %vm373_vm0, %v732_v31, %v771_v38  ;;  %v795_v41 = vrot.slane %v744_v36, 4  ;;  %v913_v44 = vrot.slane %v2520_v61, 4 }
 0x157   :  { %v770_v3 = vsel %vm373_vm0, %v769_v37, %v720_v30  ;;  %v794_v28 = vsel %vm373_vm0, %v793_v1, %v744_v36  ;;  %v780_v2 = vperm.slane %v772_v39, %v2375_v60  ;;  %v886_v52 = vperm.slane %v878_v13, %v2350_v34 }
 0x158   :  { %v776_v7 = vperm.slane %v770_v3, %v2375_v60  ;;  %v800_v54 = vperm.slane %v794_v28, %v2375_v60  ;;  %v796_v16 = vsel %vm373_vm0, %v756_v32, %v795_v41  ;;  %v890_v43 = vsel %vm373_vm0, %v2478_v19, %v889_v40 }
 0x159   :  { %v902_v27 = vsel %vm373_vm0, %v2579_v6, %v901_v48  ;;  %v804_v47 = vperm.slane %v796_v16, %v2375_v60  ;;  %v819_v10 = vrot.slane %v780_v2, 4  ;;  %v898_v55 = vperm.slane %v890_v43, %v2350_v34 }
 0x15a   :  { %v813_v45 = vrot.slane %v800_v54, 4  ;;  %v815_v46 = vrot.slane %v776_v7, 4  ;;  %v910_v56 = vperm.slane %v902_v27, %v2350_v34  ;;  %v914_v15 = vsel %vm373_vm0, %v2486_v58, %v913_v44 }
 0x15b   :  { %v937_v53 = vrot.slane %v886_v52, 4  ;;  %v820_v17 = vsel %vm373_vm0, %v804_v47, %v819_v10  ;;  %v875_v25 = vrot.slane %v2571_v33, 4  ;;  %v922_v30 = vperm.slane %v914_v15, %v2350_v34 }
 0x15c   :  { %v814_v5 = vsel %vm373_vm0, %v813_v45, %v776_v7  ;;  %v816_v9 = vsel %vm373_vm0, %v800_v54, %v815_v46  ;;  %v1052_v29 = vpack.c.bf16 %v820_v17, %v820_v17  ;;  %v935_v31 = vrot.slane %v898_v55, 4 }
 0x15d   :  { %v1049_v42 = vpack.c.bf16 %v814_v5, %v814_v5  ;;  %v1050_v26 = vpack.c.bf16 %v816_v9, %v816_v9  ;;  %v938_v32 = vsel %vm373_vm0, %v898_v55, %v937_v53  ;;  %v961_v11 = vrot.slane %v910_v56, 4 }
 0x15e   :  { %v710_v35 = vsel %vm373_vm0, %v709_v4, %v2527_v0  ;;  %v1128_v38 = vsel %vm1066_vm1, %v1052_v29, 0  ;;  %v959_v1 = vrot.slane %v922_v30, 4  ;;  %v817_v33 = vrot.slane %v804_v47, 4 }
 0x15f   :  { %v1071_v36 = vsel %vm1066_vm1, %v1049_v42, 0  ;;  %v1090_v37 = vsel %vm1066_vm1, %v1050_v26, 0  ;;  %1137 = vmatpush.bf16.xpose.msrb.mxu0 %v1128_v38  ;;  %v936_v13 = vsel %vm373_vm0, %v935_v31, %v886_v52  ;;  %v2616_v40 = vperm.slane %v938_v32, %v2375_v60 }
 0x160   :  { %1080 = vmatpush.bf16.xpose.msra.mxu3 %v1071_v36  ;;  %v962_v48 = vsel %vm373_vm0, %v922_v30, %v961_v11  ;;  %v942_v0 = vperm.slane %v936_v13, %v2375_v60  ;;  %v960_v4 = vsel %vm373_vm0, %v959_v1, %v910_v56  ;;  %v716_v28 = vperm.slane %v710_v35, %v2350_v34 }
 0x161   :  { %v2622_v3 = vperm.slane %v962_v48, %v2375_v60  ;;  %v966_v39 = vperm.slane %v960_v4, %v2375_v60  ;;  %v985_v41 = vrot.slane %v2616_v40, 4  ;;  %v722_v7 = vsel %vm373_vm0, %v721_v12, %v2513_v50 }
 0x162   :  { %v734_v54 = vsel %vm373_vm0, %v733_v23, %v2541_v20  ;;  %v981_v52 = vrot.slane %v942_v0, 4  ;;  %v728_v16 = vperm.slane %v722_v7, %v2350_v34  ;;  %v746_v27 = vsel %vm373_vm0, %v745_v21, %v2530_v59 }
 0x163   :  { %v740_v43 = vperm.slane %v734_v54, %v2350_v34  ;;  %v979_v44 = vrot.slane %v966_v39, 4  ;;  %v986_v49 = vsel %vm373_vm0, %v2622_v3, %v985_v41  ;;  %v752_v50 = vperm.slane %v746_v27, %v2350_v34 }
 0x164   :  { %v759_v12 = vrot.slane %v716_v28, 4  ;;  %v982_v51 = vsel %vm373_vm0, %v966_v39, %v981_v52  ;;  %v1056_v20 = vpack.c.bf16 %v986_v49, %v986_v49  ;;  %v757_v23 = vrot.slane %v728_v16, 4 }
 0x165   :  { %v818_v45 = vsel %vm373_vm0, %v817_v33, %v780_v2  ;;  %v899_v46 = vrot.slane %v2579_v6, 4  ;;  %v980_v47 = vsel %vm373_vm0, %v979_v44, %v942_v0  ;;  %v1054_v62 = vpack.c.bf16 %v982_v51, %v982_v51 }
 0x166   :  { %v781_v10 = vrot.slane %v752_v50, 4  ;;  %v1053_v59 = vpack.c.bf16 %v980_v47, %v980_v47  ;;  %v1204_v21 = vsel %vm1066_vm1, %v1056_v20, 0  ;;  %v758_v55 = vsel %vm373_vm0, %v757_v23, %v716_v28 }
 0x167   :  { %v760_v56 = vsel %vm373_vm0, %v728_v16, %v759_v12  ;;  %v911_v15 = vrot.slane %v2486_v58, 4  ;;  %1213 = vmatpush.bf16.xpose.msra.mxu0 %v1204_v21  ;;  %v764_v53 = vperm.slane %v758_v55, %v2375_v60  ;;  %v1051_v5 = vpack.c.bf16 %v818_v45, %v818_v45 }
 0x168   :  { %1099 = vmatpush.bf16.xpose.msrb.mxu3 %v1090_v37  ;;  %v782_v2 = vsel %vm373_vm0, %v781_v10, %v740_v43  ;;  %v1147_v6 = vsel %vm1066_vm1, %v1053_v59, 0  ;;  %v768_v17 = vperm.slane %v760_v56, %v2375_v60  ;;  %v783_v42 = vrot.slane %v740_v43, 4 }
 0x169   :  { %v788_v9 = vperm.slane %v782_v2, %v2375_v60  ;;  %1156 = vmatpush.bf16.xpose.msrb.mxu2 %v1147_v6  ;;  %v1166_v26 = vsel %vm1066_vm1, %v1054_v62, 0  ;;  %v876_v29 = vsel %vm373_vm0, %v875_v25, %v2547_v24  ;;  %v888_v58 = vsel %vm373_vm0, %v887_v63, %v2474_v18 }
 0x16a   :  { %v900_v30 = vsel %vm373_vm0, %v899_v46, %v2563_v57  ;;  %v784_v32 = vsel %vm373_vm0, %v752_v50, %v783_v42  ;;  %v811_v11 = vrot.slane %v768_v17, 4  ;;  %v882_v35 = vperm.slane %v876_v29, %v2350_v34 }
 0x16b   :  { %v805_v31 = vrot.slane %v788_v9, 4  ;;  %v792_v36 = vperm.slane %v784_v32, %v2375_v60  ;;  %v894_v37 = vperm.slane %v888_v58, %v2350_v34  ;;  %v906_v24 = vperm.slane %v900_v30, %v2350_v34 }
 0x16c   :  { %v912_v19 = vsel %vm373_vm0, %v911_v15, %v2520_v61  ;;  %v925_v57 = vrot.slane %v882_v35, 4  ;;  %v1109_v48 = vsel %vm1066_vm1, %v1051_v5, 0  ;;  %v983_v54 = vrot.slane %v2622_v3, 4 }
 0x16d   :  { %v806_v18 = vsel %vm373_vm0, %v805_v31, %v764_v53  ;;  %v918_v63 = vperm.slane %v912_v19, %v2350_v34  ;;  %v812_v38 = vsel %vm373_vm0, %v792_v36, %v811_v11  ;;  %v923_v1 = vrot.slane %v894_v37, 4 }
 0x16e   :  { %v1041_v25 = vpack.c.bf16 %v806_v18, %v806_v18  ;;  %v1044_v33 = vpack.c.bf16 %v812_v38, %v812_v38  ;;  %v949_v4 = vrot.slane %v906_v24, 4  ;;  %v926_v28 = vsel %vm373_vm0, %v894_v37, %v925_v57 }
 0x16f   :  { %v947_v13 = vrot.slane %v918_v63, 4  ;;  %v924_v61 = vsel %vm373_vm0, %v923_v1, %v882_v35  ;;  %v934_v22 = vperm.slane %v926_v28, %v2375_v60  ;;  %v807_v43 = vrot.slane %v764_v53, 4 }
 0x170   :  { %1923 = vmatmul.msk.bf16.vlgmr.msra.gmra.mxu3 %vm1066_vm1, %v1041_v25  ;;  %1926 = vmatmul.msk.bf16.vlgmr.msrb.gmra.mxu0 %vm1066_vm1, %v1044_v33  ;;  %v930_v41 = vperm.slane %v924_v61, %v2375_v60  ;;  %v950_v52 = vsel %vm373_vm0, %v918_v63, %v949_v4  ;;  %v984_v50 = vsel %vm373_vm0, %v983_v54, %v2616_v40  ;;  %v809_v62 = vrot.slane %v792_v36, 4 }
 0x171   :  { %1175 = vmatpush.bf16.xpose.msra.mxu2 %v1166_v26  ;;  %1118 = vmatpush.bf16.xpose.msra.mxu3 %v1109_v48  ;;  %v948_v0 = vsel %vm373_vm0, %v947_v13, %v906_v24  ;;  %v958_v44 = vperm.slane %v950_v52, %v2375_v60  ;;  %v977_v49 = vrot.slane %v934_v22, 4  ;;  %v808_v12 = vsel %vm373_vm0, %v788_v9, %v807_v43 }
 0x172   :  { %v954_v39 = vperm.slane %v948_v0, %v2375_v60  ;;  %v1055_v51 = vpack.c.bf16 %v984_v50, %v984_v50  ;;  %v1042_v3 = vpack.c.bf16 %v808_v12, %v808_v12  ;;  %v973_v45 = vrot.slane %v930_v41, 4 }
 0x173   :  { %v978_v20 = vsel %vm373_vm0, %v958_v44, %v977_v49  ;;  %v810_v40 = vsel %vm373_vm0, %v809_v62, %v768_v17  ;;  %v975_v21 = vrot.slane %v958_v44, 4  ;;  %v487_v5 = vrot.slane %v2390_v8, 4 }
 0x174   :  { %v971_v7 = vrot.slane %v954_v39, 4  ;;  %v1048_v23 = vpack.c.bf16 %v978_v20, %v978_v20  ;;  %v1185_v46 = vsel %vm1066_vm1, %v1055_v51, 0  ;;  %v974_v47 = vsel %vm373_vm0, %v954_v39, %v973_v45 }
 0x175   :  { %v1046_v10 = vpack.c.bf16 %v974_v47, %v974_v47  ;;  %v1043_v59 = vpack.c.bf16 %v810_v40, %v810_v40  ;;  %v976_v55 = vsel %vm373_vm0, %v975_v21, %v934_v22  ;;  %v655_v6 = vrot.slane %v2397_v14, 4 }
 0x176   :  { %v972_v16 = vsel %vm373_vm0, %v971_v7, %v930_v41  ;;  %v1047_v56 = vpack.c.bf16 %v976_v55, %v976_v55 }
 0x177   :  { %v1045_v27 = vpack.c.bf16 %v972_v16, %v972_v16 }
 0x179   :  { %1927 = vmatmul.msk.bf16.vlgmr.msrb.gmra.mxu2 %vm1066_vm1, %v1045_v27 }
 0x180   :  { %1924 = vmatmul.msk.bf16.vlgmr.msrb.gmra.mxu3 %vm1066_vm1, %v1042_v3  ;;  %1930 = vmatmul.msk.bf16.vlgmr.msra.gmra.mxu0 %vm1066_vm1, %v1048_v23 }
 0x181   :  { %1194 = vmatpush.bf16.xpose.msrb.mxu3 %v1185_v46 }
 0x188   :  { %v2061_v19 = vpop.permute.xlu2 %2060 }
 0x189   :  { %1928 = vmatmul.msk.bf16.vlgmr.msra.gmra.mxu2 %vm1066_vm1, %v1046_v10  ;;  %v2063_v63 = vunpack.i.h.bf16 %v2061_v19  ;;  %v2062_v57 = vunpack.i.l.bf16 %v2061_v19 }
 0x18b   :  { %v665_v1 = vrot.slane %v2063_v63, 4 }
 0x190   :  { %1925 = vmatmul.msk.bf16.vlgmr.msra.gmra.mxu3 %vm1066_vm1, %v1043_v59 }
 0x19f   :  { %v2056_v15 = vpop.permute.xlu1 %2055  ;;  %v2051_v9 = vpop.permute.xlu0 %2050 }
 0x1a0   :  { %1929 = vmatmul.msk.bf16.vlgmr.msrb.gmra.mxu3 %vm1066_vm1, %v1047_v56  ;;  %v2057_v53 = vunpack.i.l.bf16 %v2056_v15  ;;  %v2058_v2 = vunpack.i.h.bf16 %v2056_v15  ;;  %v2053_v58 = vunpack.i.h.bf16 %v2051_v9  ;;  %v2052_v30 = vunpack.i.l.bf16 %v2051_v9 }
 0x1a2   :  { %v485_v42 = vrot.slane %v2057_v53, 4  ;;  %v653_v26 = vrot.slane %v2058_v2, 4  ;;  %v656_v17 = vsel %vm373_vm0, %v2058_v2, %v655_v6  ;;  %v488_v29 = vsel %vm373_vm0, %v2057_v53, %v487_v5 }
 0x1a3   :  { %v664_v11 = vperm.slane %v656_v17, %v2350_v34  ;;  %v496_v35 = vperm.slane %v488_v29, %v2350_v34  ;;  %v667_v36 = vrot.slane %v2053_v58, 4  ;;  %v499_v37 = vrot.slane %v2052_v30, 4 }
 0x1a4   :  { %v486_v31 = vsel %vm373_vm0, %v485_v42, %v2390_v8  ;;  %v654_v32 = vsel %vm373_vm0, %v653_v26, %v2397_v14  ;;  %v497_v8 = vrot.slane %v2062_v57, 4  ;;  %v666_v28 = vsel %vm373_vm0, %v665_v1, %v2053_v58 }
 0x1a5   :  { %v492_v24 = vperm.slane %v486_v31, %v2350_v34  ;;  %v660_v18 = vperm.slane %v654_v32, %v2350_v34  ;;  %v691_v25 = vrot.slane %v664_v11, 4  ;;  %v523_v38 = vrot.slane %v496_v35, 4 }
 0x1a6   :  { %v500_v33 = vsel %vm373_vm0, %v2062_v57, %v499_v37  ;;  %v668_v14 = vsel %vm373_vm0, %v2063_v63, %v667_v36  ;;  %v498_v4 = vsel %vm373_vm0, %v497_v8, %v2052_v30  ;;  %v672_v22 = vperm.slane %v666_v28, %v2350_v34 }
 0x1a7   :  { %v511_v13 = vrot.slane %v492_v24, 4  ;;  %v508_v48 = vperm.slane %v500_v33, %v2350_v34  ;;  %v676_v61 = vperm.slane %v668_v14, %v2350_v34  ;;  %v679_v0 = vrot.slane %v660_v18, 4 }
 0x1a8   :  { %v504_v39 = vperm.slane %v498_v4, %v2350_v34  ;;  %v677_v49 = vrot.slane %v672_v22, 4 }
 0x1a9   :  { %v521_v41 = vrot.slane %v508_v48, 4  ;;  %v524_v7 = vsel %vm373_vm0, %v508_v48, %v523_v38  ;;  %v689_v52 = vrot.slane %v676_v61, 4  ;;  %v692_v16 = vsel %vm373_vm0, %v676_v61, %v691_v25 }
 0x1aa   :  { %v532_v54 = vperm.slane %v524_v7, %v2375_v60  ;;  %v509_v43 = vrot.slane %v504_v39, 4  ;;  %v512_v27 = vsel %vm373_vm0, %v504_v39, %v511_v13  ;;  %v680_v20 = vsel %vm373_vm0, %v672_v22, %v679_v0 }
 0x1ab   :  { %v522_v44 = vsel %vm373_vm0, %v521_v41, %v496_v35  ;;  %v520_v50 = vperm.slane %v512_v27, %v2375_v60  ;;  %v678_v23 = vsel %vm373_vm0, %v677_v49, %v660_v18  ;;  %v688_v45 = vperm.slane %v680_v20, %v2375_v60 }
 0x1ac   :  { %v528_v12 = vperm.slane %v522_v44, %v2375_v60  ;;  %v539_v51 = vrot.slane %v532_v54, 4  ;;  %v510_v3 = vsel %vm373_vm0, %v509_v43, %v492_v24  ;;  %v690_v46 = vsel %vm373_vm0, %v689_v52, %v664_v11 }
 0x1ad   :  { %v516_v47 = vperm.slane %v510_v3, %v2375_v60  ;;  %v535_v62 = vrot.slane %v520_v50, 4  ;;  %v684_v59 = vperm.slane %v678_v23, %v2375_v60  ;;  %v696_v21 = vperm.slane %v690_v46, %v2375_v60 }
 0x1ae   :  { %v537_v10 = vrot.slane %v528_v12, 4  ;;  %v540_v40 = vsel %vm373_vm0, 0.0, %v539_v51  ;;  %v700_v55 = vperm.slane %v692_v16, %v2375_v60  ;;  %v703_v56 = vrot.slane %v688_v45, 4 }
 0x1af   :  { %v533_v15 = vrot.slane %v516_v47, 4  ;;  %v536_v53 = vsel %vm373_vm0, 0.0, %v535_v62  ;;  %v837_v5 = vrot.slane %v540_v40, 4  ;;  %v701_v6 = vrot.slane %v684_v59, 4 }
 0x1b0   :  { %v538_v2 = vsel %vm373_vm0, 0.0, %v537_v10  ;;  %v704_v9 = vsel %vm373_vm0, 0.0, %v703_v56  ;;  %v705_v42 = vrot.slane %v696_v21, 4  ;;  %v707_v26 = vrot.slane %v700_v55, 4 }
 0x1b1   :  { %v826_v17 = vrot.slane %v536_v53, 4  ;;  %v992_v29 = vrot.slane %v704_v9, 4  ;;  %v534_v58 = vsel %vm373_vm0, 0.0, %v533_v15  ;;  %v821_v30 = vsel %vm373_vm0, %v535_v62, %v516_v47 }
 0x1b2   :  { %v702_v31 = vsel %vm373_vm0, 0.0, %v701_v6  ;;  %v706_v32 = vsel %vm373_vm0, 0.0, %v705_v42  ;;  %v708_v11 = vsel %vm373_vm0, 0.0, %v707_v26  ;;  %v998_v35 = vsel %vm373_vm0, %v707_v26, %v696_v21 }
 0x1b3   :  { %v1003_v36 = vrot.slane %v708_v11, 4  ;;  %v825_v37 = vperm.slane %v821_v30, %v2350_v34  ;;  %v827_v24 = vsel %vm373_vm0, %v826_v17, %v534_v58  ;;  %v832_v19 = vsel %vm373_vm0, %v539_v51, %v528_v12 }
 0x1b4   :  { %v831_v18 = vperm.slane %v827_v24, %v2350_v34  ;;  %v836_v63 = vperm.slane %v832_v19, %v2350_v34  ;;  %v838_v57 = vsel %vm373_vm0, %v837_v5, %v538_v2  ;;  %v987_v25 = vsel %vm373_vm0, %v703_v56, %v684_v59 }
 0x1b5   :  { %v1004_v38 = vsel %vm373_vm0, %v1003_v36, %v706_v32  ;;  %v842_v1 = vperm.slane %v838_v57, %v2350_v34  ;;  %v845_v8 = vrot.slane %v825_v37, 4  ;;  %v991_v33 = vperm.slane %v987_v25, %v2350_v34 }
 0x1b6   :  { %v843_v14 = vrot.slane %v831_v18, 4  ;;  %v857_v13 = vrot.slane %v836_v63, 4  ;;  %v993_v48 = vsel %vm373_vm0, %v992_v29, %v702_v31  ;;  %v1002_v61 = vperm.slane %v998_v35, %v2350_v34 }
 0x1b7   :  { %v855_v0 = vrot.slane %v842_v1, 4  ;;  %v997_v4 = vperm.slane %v993_v48, %v2350_v34  ;;  %v1008_v28 = vperm.slane %v1004_v38, %v2350_v34  ;;  %v846_v39 = vsel %vm373_vm0, %v831_v18, %v845_v8  ;;  %v1065_v8 = vld [vmem:[#allocation5] sm:$0xff] }
 0x1b8   :  { %v844_v41 = vsel %vm373_vm0, %v843_v14, %v825_v37  ;;  %v854_v7 = vperm.slane %v846_v39, %v2375_v60  ;;  %v858_v22 = vsel %vm373_vm0, %v842_v1, %v857_v13  ;;  %v1011_v54 = vrot.slane %v991_v33, 4 }
 0x1b9   :  { %v850_v52 = vperm.slane %v844_v41, %v2375_v60  ;;  %v856_v16 = vsel %vm373_vm0, %v855_v0, %v836_v63  ;;  %v1009_v43 = vrot.slane %v997_v4, 4  ;;  %v1021_v27 = vrot.slane %v1008_v28, 4 }
 0x1ba   :  { %v862_v44 = vperm.slane %v856_v16, %v2375_v60  ;;  %v866_v49 = vperm.slane %v858_v22, %v2375_v60  ;;  %v1012_v50 = vsel %vm373_vm0, %v997_v4, %v1011_v54  ;;  %v1023_v12 = vrot.slane %v1002_v61, 4 }
 0x1bb   :  { %v869_v51 = vrot.slane %v850_v52, 4  ;;  %v1010_v20 = vsel %vm373_vm0, %v1009_v43, %v991_v33  ;;  %v1022_v3 = vsel %vm373_vm0, %v1021_v27, %v1002_v61  ;;  %v1020_v23 = vperm.slane %v1012_v50, %v2375_v60 }
 0x1bc   :  { %v867_v45 = vrot.slane %v862_v44, 4  ;;  %v1016_v46 = vperm.slane %v1010_v20, %v2375_v60  ;;  %v1028_v47 = vperm.slane %v1022_v3, %v2375_v60  ;;  %v871_v62 = vrot.slane %v866_v49, 4 }
 0x1bd   :  { %v870_v10 = vsel %vm373_vm0, %v862_v44, %v869_v51  ;;  %v1024_v40 = vsel %vm373_vm0, %v1008_v28, %v1023_v12  ;;  %v873_v59 = vrot.slane %v854_v7, 4  ;;  %v1039_v21 = vrot.slane %v1020_v23, 4 }
 0x1be   :  { %v868_v55 = vsel %vm373_vm0, %v867_v45, %v850_v52  ;;  %v1033_v56 = vrot.slane %v1028_v47, 4  ;;  %v1058_v15 = vpack.c.bf16 %v870_v10, %v870_v10  ;;  %v872_v53 = vsel %vm373_vm0, %v871_v62, %v854_v7 }
 0x1bf   :  { %v1057_v2 = vpack.c.bf16 %v868_v55, %v868_v55  ;;  %v1059_v5 = vpack.c.bf16 %v872_v53, %v872_v53  ;;  %v1035_v6 = vrot.slane %v1016_v46, 4  ;;  %v1032_v9 = vperm.slane %v1024_v40, %v2375_v60 }
 0x1c0   :  { %v1034_v42 = vsel %vm373_vm0, %v1033_v56, %v1016_v46  ;;  %v1324_v26 = vsel %vm1303_vm2, %v1058_v15, 0  ;;  %v874_v17 = vsel %vm373_vm0, %v866_v49, %v873_v59 }
 0x1c1   :  { %v1305_v29 = vsel %vm1303_vm2, %v1057_v2, 0  ;;  %v1061_v58 = vpack.c.bf16 %v1034_v42, %v1034_v42  ;;  %1333 = vmatpush.bf16.msrb.mxu2 %v1324_v26  ;;  %v1343_v30 = vsel %vm1303_vm2, %v1059_v5, 0  ;;  %v1036_v31 = vsel %vm373_vm0, %v1028_v47, %v1035_v6 }
 0x1c2   :  { %1314 = vmatpush.bf16.msrb.mxu1 %v1305_v29  ;;  %1352 = vmatpush.bf16.msra.mxu3 %v1343_v30  ;;  %v1062_v32 = vpack.c.bf16 %v1036_v31, %v1036_v31  ;;  %v1037_v11 = vrot.slane %v1032_v9, 4  ;;  %v1060_v35 = vpack.c.bf16 %v874_v17, %v874_v17  ;;  %v1040_v36 = vsel %vm373_vm0, %v1032_v9, %v1039_v21 }
 0x1c3   :  { %v1381_v37 = vsel %vm1303_vm2, %v1061_v58, 0  ;;  %v1064_v24 = vpack.c.bf16 %v1040_v36, %v1040_v36 }
 0x1c4   :  { %v1400_v19 = vsel %vm1303_vm2, %v1062_v32, 0  ;;  %v1038_v18 = vsel %vm373_vm0, %v1037_v11, %v1020_v23  ;;  %v1362_v63 = vsel %vm1303_vm2, %v1060_v35, 0 }
 0x1c5   :  { %1409 = vmatpush.bf16.msra.mxu2 %v1400_v19  ;;  %v1063_v57 = vpack.c.bf16 %v1038_v18, %v1038_v18  ;;  %1371 = vmatpush.bf16.msrb.mxu0 %v1362_v63  ;;  %v1438_v25 = vsel %vm1303_vm2, %v1064_v24, 0 }
 0x1c6   :  { %1390 = vmatpush.bf16.msra.mxu1 %v1381_v37 }
 0x1c7   :  { %v1419_v1 = vsel %vm1303_vm2, %v1063_v57, 0 }
 0x1c8   :  { %1428 = vmatpush.bf16.msrb.mxu3 %v1419_v1 }
 0x1c9   :  { %1447 = vmatpush.bf16.msra.mxu0 %v1438_v25 }
 0x1ed   :  { %v1139_v38 = vpop.f32.mrf.mxu0 }
 0x1ee   :  { %v1140_v61 = vadd.f32 %v1139_v38, %v1065_v8 }
 0x1f0   :  { %v1229_v39 = vsel %vm1219_vm3, %v1140_v61, -inf }
 0x1f3   :  { %v1082_v33 = vpop.f32.mrf.mxu3 }
 0x1f4   :  { %v1083_v14 = vadd.f32 %v1082_v33, %v1065_v8 }
 0x1f5   :  { %v1141_v13 = vpop.f32.mrf.mxu0 }
 0x1f6   :  { %v1220_v48 = vsel %vm1219_vm3, %v1083_v14, -inf }
 0x1f7   :  { %1221 = vmax.xlane.f32.xlu2 %v1220_v48 }
 0x1fb   :  { %v1084_v0 = vpop.f32.mrf.mxu3 }
 0x1fc   :  { %v1158_v4 = vpop.f32.mrf.mxu2 }
 0x1fd   :  { %v1215_v28 = vpop.f32.mrf.mxu0  ;;  %v1159_v41 = vadd.f32 %v1158_v4, %v1065_v8 }
 0x1fe   :  { %v2804_v62 = vadd.f32 %v1215_v28, %v1065_v8 }
 0x1ff   :  { %1230 = vmax.xlane.f32.xlu2 %v1229_v39  ;;  %v1232_v43 = vsel %vm1219_vm3, %v1159_v41, -inf }
 0x200   :  { %v1241_v40 = vsel %vm1219_vm3, %v2804_v62, -inf }
 0x203   :  { %v1101_v7 = vpop.f32.mrf.mxu3 }
 0x204   :  { %v1160_v22 = vpop.f32.mrf.mxu2  ;;  %v1102_v54 = vadd.f32 %v1101_v7, %v1065_v8 }
 0x205   :  { %v1217_v52 = vpop.f32.mrf.mxu0 }
 0x206   :  { %v1223_v16 = vsel %vm1219_vm3, %v1102_v54, -inf }
 0x207   :  { %1224 = vmax.xlane.f32.xlu1 %v1223_v16  ;;  %1233 = vmax.xlane.f32.xlu2 %v1232_v43 }
 0x20b   :  { %v1103_v27 = vpop.f32.mrf.mxu3 }
 0x20c   :  { %v1177_v44 = vpop.f32.mrf.mxu2 }
 0x20d   :  { %v1178_v49 = vadd.f32 %v1177_v44, %v1065_v8 }
 0x20f   :  { %v1235_v50 = vsel %vm1219_vm3, %v1178_v49, -inf }
 0x210   :  { %1236 = vmax.xlane.f32.xlu1 %v1235_v50 }
 0x213   :  { %v1120_v12 = vpop.f32.mrf.mxu3 }
 0x214   :  { %v1179_v51 = vpop.f32.mrf.mxu2  ;;  %v1121_v20 = vadd.f32 %v1120_v12, %v1065_v8 }
 0x216   :  { %v1226_v3 = vsel %vm1219_vm3, %v1121_v20, -inf }
 0x217   :  { %1227 = vmax.xlane.f32.xlu0 %v1226_v3 }
 0x21b   :  { %v1122_v23 = vpop.f32.mrf.mxu3 }
 0x223   :  { %v1196_v45 = vpop.f32.mrf.mxu3 }
 0x224   :  { %v1197_v46 = vadd.f32 %v1196_v45, %v1065_v8 }
 0x226   :  { %v1238_v47 = vsel %vm1219_vm3, %v1197_v46, -inf }
 0x227   :  { %1239 = vmax.xlane.f32.xlu0 %v1238_v47 }
 0x22b   :  { %v1198_v10 = vpop.f32.mrf.mxu3 }
 0x22f   :  { %1242 = vmax.xlane.f32.xlu0 %v1241_v40 }
 0x26a   :  { %v1222_v59 = vpop.xlane.xlu2 %1221 }
 0x26b   :  { %v1244_v21 = vsub.f32 %v1083_v14, %v1222_v59 }
 0x26d   :  { %v1252_v55 = vmul.f32 1.442695, %v1244_v21 }
 0x26f   :  { %2080 = vpow2.f32 %v1252_v55 }
 0x272   :  { %v1231_v56 = vpop.xlane.xlu2 %1230 }
 0x273   :  { %v1247_v15 = vsub.f32 %v1140_v61, %v1231_v56 }
 0x275   :  { %v2081_v53 = vpop.eup %2080  ;;  %v1258_v2 = vmul.f32 1.442695, %v1247_v15 }
 0x276   :  { %v1268_v5 = vsel %vm1219_vm3, %v2081_v53, 0.0  ;;  %v1292_v6 = vpack.c.bf16 %v2081_v53, %v2081_v53 }
 0x277   :  { %2082 = vpow2.f32 %v1258_v2  ;;  %1269 = vadd.xlane.f32.xlu0 %v1268_v5 }
 0x278   :  { %1931 = vmatmul.msk.bf16.vlgmr.msrb.gmra.mxu1 %vm1219_vm3, %v1292_v6 }
 0x27a   :  { %v1225_v9 = vpop.xlane.xlu1 %1224  ;;  %v1234_v42 = vpop.xlane.xlu2 %1233 }
 0x27b   :  { %v1245_v26 = vsub.f32 %v1102_v54, %v1225_v9  ;;  %v1248_v17 = vsub.f32 %v1159_v41, %v1234_v42 }
 0x27d   :  { %v2083_v29 = vpop.eup %2082  ;;  %v1254_v58 = vmul.f32 1.442695, %v1245_v26  ;;  %v1260_v30 = vmul.f32 1.442695, %v1248_v17 }
 0x27e   :  { %v1295_v31 = vpack.c.bf16 %v2083_v29, %v2083_v29  ;;  %v1277_v32 = vsel %vm1219_vm3, %v2083_v29, 0.0 }
 0x27f   :  { %2084 = vpow2.f32 %v1254_v58  ;;  %1278 = vadd.xlane.f32.xlu1 %v1277_v32 }
 0x280   :  { %2086 = vpow2.f32 %v1260_v30  ;;  %1934 = vmatmul.msk.bf16.vlgmr.msrb.gmra.mxu0 %vm1219_vm3, %v1295_v31 }
 0x283   :  { %v1237_v11 = vpop.xlane.xlu1 %1236 }
 0x284   :  { %v1249_v36 = vsub.f32 %v1178_v49, %v1237_v11 }
 0x285   :  { %v2085_v35 = vpop.eup %2084 }
 0x286   :  { %v2087_v37 = vpop.eup %2086  ;;  %v1293_v24 = vpack.c.bf16 %v2085_v35, %v2085_v35  ;;  %v1262_v63 = vmul.f32 1.442695, %v1249_v36  ;;  %v1271_v4 = vsel %vm1219_vm3, %v2085_v35, 0.0 }
 0x287   :  { %v1296_v19 = vpack.c.bf16 %v2087_v37, %v2087_v37  ;;  %v1280_v18 = vsel %vm1219_vm3, %v2087_v37, 0.0 }
 0x288   :  { %1281 = vadd.xlane.f32.xlu2 %v1280_v18  ;;  %1932 = vmatmul.msk.bf16.vlgmr.msrb.gmra.mxu2 %vm1219_vm3, %v1293_v24  ;;  %2088 = vpow2.f32 %v1262_v63 }
 0x289   :  { %1935 = vmatmul.msk.bf16.vlgmr.msra.gmra.mxu1 %vm1219_vm3, %v1296_v19 }
 0x28a   :  { %v1228_v57 = vpop.xlane.xlu0 %1227 }
 0x28b   :  { %v1246_v25 = vsub.f32 %v1121_v20, %v1228_v57 }
 0x28d   :  { %v1256_v38 = vmul.f32 1.442695, %v1246_v25 }
 0x28e   :  { %v2089_v1 = vpop.eup %2088 }
 0x28f   :  { %2090 = vpow2.f32 %v1256_v38  ;;  %v1297_v33 = vpack.c.bf16 %v2089_v1, %v2089_v1  ;;  %v1283_v27 = vsel %vm1219_vm3, %v2089_v1, 0.0 }
 0x295   :  { %v2091_v8 = vpop.eup %2090 }
 0x296   :  { %v1294_v14 = vpack.c.bf16 %v2091_v8, %v2091_v8  ;;  %v1274_v13 = vsel %vm1219_vm3, %v2091_v8, 0.0 }
 0x297   :  { %1275 = vadd.xlane.f32.xlu1 %v1274_v13 }
 0x298   :  { %1933 = vmatmul.msk.bf16.vlgmr.msra.gmra.mxu3 %vm1219_vm3, %v1294_v14  ;;  %1936 = vmatmul.msk.bf16.vlgmr.msra.gmra.mxu2 %vm1219_vm3, %v1297_v33 }
 0x29a   :  { %v1240_v48 = vpop.xlane.xlu0 %1239 }
 0x29b   :  { %v1250_v61 = vsub.f32 %v1197_v46, %v1240_v48 }
 0x29d   :  { %v1264_v0 = vmul.f32 1.442695, %v1250_v61 }
 0x29f   :  { %2092 = vpow2.f32 %v1264_v0  ;;  %1272 = vadd.xlane.f32.xlu1 %v1271_v4 }
 0x2a2   :  { %v1243_v28 = vpop.xlane.xlu0 %1242 }
 0x2a3   :  { %v1251_v39 = vsub.f32 %v2804_v62, %v1243_v28 }
 0x2a5   :  { %v2093_v41 = vpop.eup %2092  ;;  %v1266_v7 = vmul.f32 1.442695, %v1251_v39 }
 0x2a6   :  { %v1298_v22 = vpack.c.bf16 %v2093_v41, %v2093_v41  ;;  %v1286_v54 = vsel %vm1219_vm3, %v2093_v41, 0.0 }
 0x2a7   :  { %2094 = vpow2.f32 %v1266_v7  ;;  %1287 = vadd.xlane.f32.xlu2 %v1286_v54 }
 0x2a8   :  { %1937 = vmatmul.msk.bf16.vlgmr.msrb.gmra.mxu3 %vm1219_vm3, %v1298_v22 }
 0x2ad   :  { %v2095_v52 = vpop.eup %2094 }
 0x2ae   :  { %v1299_v16 = vpack.c.bf16 %v2095_v52, %v2095_v52  ;;  %v1289_v43 = vsel %vm1219_vm3, %v2095_v52, 0.0 }
 0x2af   :  { %1290 = vadd.xlane.f32.xlu0 %v1289_v43  ;;  %1284 = vadd.xlane.f32.xlu2 %v1283_v27 }
 0x2b0   :  { %1938 = vmatmul.msk.bf16.vlgmr.msra.gmra.mxu0 %vm1219_vm3, %v1299_v16 }
 0x2ea   :  { %v1270_v45 = vpop.xlane.xlu0 %1269 }
 0x2f2   :  { %v1279_v12 = vpop.xlane.xlu1 %1278 }
 0x2f3   :  { %2096 = vrcp.f32 %v1279_v12 }
 0x2f4   :  { %2098 = vrcp.f32 %v1270_v45 }
 0x2f5   :  { %v1316_v44 = vpop.f32.mrf.mxu1 }
 0x2f9   :  { %v2097_v40 = vpop.eup %2096 }
 0x2fa   :  { %v2099_v21 = vpop.eup %2098 }
 0x2fb   :  { %v1282_v47 = vpop.xlane.xlu2 %1281  ;;  %v1461_v55 = vmul.f32 %v2099_v21, %v1316_v44 }
 0x2fd   :  { %v1318_v49 = vpop.f32.mrf.mxu1  ;;  %v1373_v50 = vpop.f32.mrf.mxu0  ;;  %v1471_v42 = vrot.slane %v1461_v55, 4 }
 0x2fe   :  { %v1464_v59 = vmul.f32 %v2097_v40, %v1373_v50 }
 0x300   :  { %v1481_v15 = vrot.slane %v1464_v59, 4 }
 0x305   :  { %v1375_v51 = vpop.f32.mrf.mxu0 }
 0x306   :  { %v1392_v20 = vpop.f32.mrf.mxu1 }
 0x30a   :  { %v1276_v3 = vpop.xlane.xlu1 %1275 }
 0x30b   :  { %v1335_v23 = vpop.f32.mrf.mxu2 }
 0x30e   :  { %v1394_v46 = vpop.f32.mrf.mxu1 }
 0x312   :  { %v1273_v62 = vpop.xlane.xlu1 %1272 }
 0x313   :  { %2100 = vrcp.f32 %v1273_v62  ;;  %v1337_v10 = vpop.f32.mrf.mxu2 }
 0x314   :  { %2102 = vrcp.f32 %v1276_v3 }
 0x315   :  { %2104 = vrcp.f32 %v1282_v47 }
 0x319   :  { %v2101_v56 = vpop.eup %2100 }
 0x31a   :  { %v1462_v53 = vmul.f32 %v2101_v56, %v1335_v23  ;;  %v1288_v2 = vpop.xlane.xlu2 %1287  ;;  %v2103_v5 = vpop.eup %2102 }
 0x31b   :  { %v1354_v6 = vpop.f32.mrf.mxu3  ;;  %v1411_v9 = vpop.f32.mrf.mxu2  ;;  %2106 = vrcp.f32 %v1288_v2 }
 0x31c   :  { %v1482_v26 = vsel %vm373_vm0, %v1481_v15, %v1462_v53  ;;  %v1483_v17 = vrot.slane %v1462_v53, 4  ;;  %v1463_v29 = vmul.f32 %v2103_v5, %v1354_v6  ;;  %v2105_v4 = vpop.eup %2104 }
 0x31d   :  { %v1488_v58 = vperm.slane %v1482_v26, %v2350_v34  ;;  %v1465_v7 = vmul.f32 %v2105_v4, %v1392_v20 }
 0x31e   :  { %v1484_v30 = vsel %vm373_vm0, %v1464_v59, %v1483_v17  ;;  %v1469_v31 = vrot.slane %v1463_v29, 4  ;;  %v1472_v32 = vsel %vm373_vm0, %v1463_v29, %v1471_v42 }
 0x31f   :  { %v1492_v11 = vperm.slane %v1484_v30, %v2350_v34  ;;  %v1480_v35 = vperm.slane %v1472_v32, %v2350_v34  ;;  %v1493_v37 = vrot.slane %v1488_v58, 4  ;;  %v1527_v51 = vrot.slane %v1465_v7, 4 }
 0x320   :  { %v1470_v36 = vsel %vm373_vm0, %v1469_v31, %v1461_v55 }
 0x321   :  { %v1476_v24 = vperm.slane %v1470_v36, %v2350_v34  ;;  %v1505_v19 = vrot.slane %v1492_v11, 4  ;;  %v1507_v18 = vrot.slane %v1480_v35, 4  ;;  %v2107_v27 = vpop.eup %2106 }
 0x322   :  { %v1285_v63 = vpop.xlane.xlu2 %1284  ;;  %v1291_v61 = vpop.xlane.xlu0 %1290 }
 0x323   :  { %v1494_v57 = vsel %vm373_vm0, %v1493_v37, %v1476_v24  ;;  %v1495_v25 = vrot.slane %v1476_v24, 4  ;;  %v1506_v38 = vsel %vm373_vm0, %v1505_v19, %v1480_v35  ;;  %v1508_v1 = vsel %vm373_vm0, %v1492_v11, %v1507_v18  ;;  %v1356_v8 = vpop.f32.mrf.mxu3  ;;  %v1413_v33 = vpop.f32.mrf.mxu2 }
 0x324   :  { %v1500_v14 = vperm.slane %v1494_v57, %v2375_v60  ;;  %v1512_v13 = vperm.slane %v1506_v38, %v2375_v60  ;;  %v1516_v48 = vperm.slane %v1508_v1, %v2375_v60  ;;  %2108 = vrcp.f32 %v1285_v63 }
 0x325   :  { %v1496_v0 = vsel %vm373_vm0, %v1488_v58, %v1495_v25  ;;  %2110 = vrcp.f32 %v1291_v61 }
 0x326   :  { %v1504_v28 = vperm.slane %v1496_v0, %v2375_v60  ;;  %v1521_v39 = vrot.slane %v1512_v13, 4  ;;  %v1523_v41 = vrot.slane %v1516_v48, 4  ;;  %v1517_v22 = vrot.slane %v1500_v14, 4 }
 0x328   :  { %v1519_v54 = vrot.slane %v1504_v28, 4  ;;  %v1524_v52 = vsel %vm373_vm0, 0.0, %v1523_v41  ;;  %v1592_v16 = vsel %vm373_vm0, %v1523_v41, %v1512_v13  ;;  %v1522_v49 = vsel %vm373_vm0, 0.0, %v1521_v39 }
 0x329   :  { %v1597_v43 = vrot.slane %v1524_v52, 4  ;;  %v1518_v20 = vsel %vm373_vm0, 0.0, %v1517_v22  ;;  %v1596_v62 = vperm.slane %v1592_v16, %v2350_v34 }
 0x32a   :  { %v1520_v44 = vsel %vm373_vm0, 0.0, %v1519_v54  ;;  %v1581_v50 = vsel %vm373_vm0, %v1519_v54, %v1500_v14  ;;  %v2109_v12 = vpop.eup %2108 }
 0x32b   :  { %v1430_v3 = vpop.f32.mrf.mxu3  ;;  %v1586_v23 = vrot.slane %v1520_v44, 4  ;;  %v1598_v45 = vsel %vm373_vm0, %v1597_v43, %v1522_v49  ;;  %v1466_v46 = vmul.f32 %v2109_v12, %v1411_v9  ;;  %v2111_v40 = vpop.eup %2110  ;;  %v1585_v21 = vperm.slane %v1581_v50, %v2350_v34 }
 0x32c   :  { %v1467_v47 = vmul.f32 %v2107_v27, %v1430_v3  ;;  %v1602_v10 = vperm.slane %v1598_v45, %v2350_v34  ;;  %v1617_v29 = vrot.slane %v1596_v62, 4 }
 0x32d   :  { %v1449_v59 = vpop.f32.mrf.mxu0  ;;  %v1587_v55 = vsel %vm373_vm0, %v1586_v23, %v1518_v20  ;;  %v1539_v2 = vrot.slane %v1466_v46, 4  ;;  %v1605_v35 = vrot.slane %v1585_v21, 4 }
 0x32e   :  { %v1525_v56 = vrot.slane %v1467_v47, 4  ;;  %v1528_v15 = vsel %vm373_vm0, %v1467_v47, %v1527_v51  ;;  %v1468_v53 = vmul.f32 %v2111_v40, %v1449_v59  ;;  %v1591_v6 = vperm.slane %v1587_v55, %v2350_v34 }
 0x32f   :  { %v1536_v5 = vperm.slane %v1528_v15, %v2350_v34  ;;  %v1615_v9 = vrot.slane %v1602_v10, 4  ;;  %v1618_v13 = vsel %vm373_vm0, %v1602_v10, %v1617_v29 }
 0x330   :  { %v1526_v42 = vsel %vm373_vm0, %v1525_v56, %v1465_v7  ;;  %v1537_v26 = vrot.slane %v1468_v53, 4  ;;  %v1540_v17 = vsel %vm373_vm0, %v1468_v53, %v1539_v2  ;;  %v1603_v32 = vrot.slane %v1591_v6, 4 }
 0x331   :  { %v1532_v58 = vperm.slane %v1526_v42, %v2350_v34  ;;  %v1563_v30 = vrot.slane %v1536_v5, 4  ;;  %v1548_v31 = vperm.slane %v1540_v17, %v2350_v34  ;;  %v1616_v36 = vsel %vm373_vm0, %v1615_v9, %v1596_v62 }
 0x332   :  { %v1538_v11 = vsel %vm373_vm0, %v1537_v26, %v1466_v46  ;;  %v1604_v25 = vsel %vm373_vm0, %v1603_v32, %v1585_v21  ;;  %v1622_v38 = vperm.slane %v1616_v36, %v2375_v60  ;;  %v1606_v4 = vsel %vm373_vm0, %v1591_v6, %v1605_v35 }
 0x333   :  { %v1551_v37 = vrot.slane %v1532_v58, 4  ;;  %v1544_v24 = vperm.slane %v1538_v11, %v2350_v34  ;;  %v1561_v19 = vrot.slane %v1548_v31, 4  ;;  %v1564_v18 = vsel %vm373_vm0, %v1548_v31, %v1563_v30  ;;  %v1432_v63 = vpop.f32.mrf.mxu3 }
 0x334   :  { %v1572_v57 = vperm.slane %v1564_v18, %v2375_v60  ;;  %v1610_v39 = vperm.slane %v1604_v25, %v2375_v60  ;;  %v1627_v41 = vrot.slane %v1622_v38, 4  ;;  %v1614_v27 = vperm.slane %v1606_v4, %v2375_v60  ;;  %v2002_v25 = vld [vmem:[#allocation10 + $0x38] sm:$0xff] }
 0x335   :  { %v1549_v1 = vrot.slane %v1544_v24, 4  ;;  %v1552_v8 = vsel %vm373_vm0, %v1544_v24, %v1551_v37  ;;  %v1562_v33 = vsel %vm373_vm0, %v1561_v19, %v1536_v5  ;;  %v1451_v14 = vpop.f32.mrf.mxu0  ;;  %v1626_v44 = vperm.slane %v1618_v13, %v2375_v60  ;;  %1790 = vmatpush.bf16.msrb.mxu1 %v2002_v25  ;;  %v1997_v13 = vld [vmem:[#allocation10 + $0x10] sm:$0xff] }
 0x336   :  { %v1560_v48 = vperm.slane %v1552_v8, %v2375_v60  ;;  %v1568_v61 = vperm.slane %v1562_v33, %v2375_v60  ;;  %v1579_v0 = vrot.slane %v1572_v57, 4  ;;  %v2888_v62 = vsel %vm373_vm0, %v1627_v41, %v1610_v39  ;;  %v2000_v8 = vld [vmem:[#allocation10 + $0x28] sm:$0xff]  ;;  %v1999_v33 = vld [vmem:[#allocation10 + $0x20] sm:$0xff]  ;;  %v1998_v14 = vld [vmem:[#allocation10 + $0x18] sm:$0xff] }
 0x337   :  { %v1550_v28 = vsel %vm373_vm0, %v1549_v1, %v1532_v58  ;;  %v1631_v56 = vrot.slane %v1626_v44, 4  ;;  %v1633_v15 = vrot.slane %v1614_v27, 4  ;;  %v1629_v58 = vrot.slane %v1610_v39, 4  ;;  %v2001_v1 = vld [vmem:[#allocation10 + $0x30] sm:$0xff] }
 0x338   :  { %v1556_v7 = vperm.slane %v1550_v28, %v2375_v60  ;;  %v1575_v22 = vrot.slane %v1560_v48, 4  ;;  %v1577_v54 = vrot.slane %v1568_v61, 4  ;;  %v1580_v52 = vsel %vm373_vm0, 0.0, %v1579_v0  ;;  %v1995_v48 = vld [vmem:[#allocation10] sm:$0xff] }
 0x339   :  { %v1646_v16 = vsel %vm373_vm0, %v1579_v0, %v1568_v61  ;;  %v1651_v43 = vrot.slane %v1580_v52, 4  ;;  %v1632_v32 = vsel %vm373_vm0, %v1631_v56, %v1614_v27  ;;  %v1634_v35 = vsel %vm373_vm0, %v1626_v44, %v1633_v15  ;;  %1791 = vmatpush.bf16.msrb.mxu1 %v2001_v1 }
 0x33a   :  { %v1573_v49 = vrot.slane %v1556_v7, 4  ;;  %v1576_v50 = vsel %vm373_vm0, 0.0, %v1575_v22  ;;  %v1578_v12 = vsel %vm373_vm0, 0.0, %v1577_v54  ;;  %v1635_v51 = vsel %vm373_vm0, %v1575_v22, %v1556_v7 }
 0x33b   :  { %v1640_v3 = vrot.slane %v1576_v50, 4  ;;  %v1639_v20 = vperm.slane %v1635_v51, %v2350_v34  ;;  %v1650_v23 = vperm.slane %v1646_v16, %v2350_v34  ;;  %v1652_v45 = vsel %vm373_vm0, %v1651_v43, %v1578_v12  ;;  %v2079_v12 = vld [vmem:[%s2927_s5] ss:$0 sm:$0xff] }
 0x33c   :  { %v1574_v46 = vsel %vm373_vm0, 0.0, %v1573_v49  ;;  %v1656_v47 = vperm.slane %v1652_v45, %v2350_v34  ;;  %v1630_v63 = vsel %vm373_vm0, %v1622_v38, %v1629_v58  ;;  %v1996_v38 = vld [vmem:[#allocation10 + $0x8] sm:$0xff] }
 0x33d   :  { %v1641_v10 = vsel %vm373_vm0, %v1640_v3, %v1574_v46  ;;  %v1659_v40 = vrot.slane %v1639_v20, 4  ;;  %v1671_v59 = vrot.slane %v1650_v23, 4  ;;  %1792 = vmatpush.bf16.msrb.mxu1 %v2000_v8 }
 0x33e   :  { %v1645_v21 = vperm.slane %v1641_v10, %v2350_v34  ;;  %v1669_v55 = vrot.slane %v1656_v47, 4 }
 0x33f   :  { %v1672_v53 = vsel %vm373_vm0, %v1656_v47, %v1671_v59 }
 0x340   :  { %v1660_v2 = vsel %vm373_vm0, %v1645_v21, %v1659_v40  ;;  %v1680_v5 = vperm.slane %v1672_v53, %v2375_v60  ;;  %v1657_v6 = vrot.slane %v1645_v21, 4  ;;  %v1670_v9 = vsel %vm373_vm0, %v1669_v55, %v1650_v23 }
 0x341   :  { %v1668_v42 = vperm.slane %v1660_v2, %v2375_v60  ;;  %v1676_v26 = vperm.slane %v1670_v9, %v2375_v60  ;;  %1793 = vmatpush.bf16.msrb.mxu1 %v1999_v33 }
 0x342   :  { %v1685_v17 = vrot.slane %v1680_v5, 4  ;;  %v1658_v29 = vsel %vm373_vm0, %v1657_v6, %v1639_v20 }
 0x343   :  { %v1687_v34 = vrot.slane %v1668_v42, 4  ;;  %v1664_v30 = vperm.slane %v1658_v29, %v2375_v60  ;;  %v1681_v31 = vrot.slane %v1676_v26, 4 }
 0x344   :  { %v1686_v11 = vsel %vm373_vm0, %v1685_v17, %v1668_v42 }
 0x345   :  { %v2069_v36 = vpack.i.bf16 %v1686_v11, %v1632_v32  ;;  %v1688_v37 = vsel %vm373_vm0, %v1680_v5, %v1687_v34  ;;  %v1683_v24 = vrot.slane %v1664_v30, 4  ;;  %v1682_v19 = vsel %vm373_vm0, %v1681_v31, %v1664_v30  ;;  %1794 = vmatpush.bf16.msrb.mxu1 %v1998_v14 }
 0x346   :  { %v2074_v18 = vpack.i.bf16 %v1688_v37, %v1634_v35 }
 0x347   :  { %2070 = vrot.lane.b32.xlu1 %v2069_v36, %s2273_s22  ;;  %v1684_v60 = vsel %vm373_vm0, %v1676_v26, %v1683_v24 }
 0x348   :  { %2075 = vrot.lane.b32.xlu2 %v2074_v18, %s2275_s4  ;;  %v2064_v57 = vpack.i.bf16 %v1684_v60, %v1630_v63 }
 0x349   :  { %1795 = vmatpush.bf16.msrb.mxu1 %v1997_v13 }
 0x34a   :  { %2065 = vrot.lane.b32.xlu0 %v2064_v57, %s2276_s24 }
 0x34d   :  { %1796 = vmatpush.bf16.msrb.mxu1 %v1996_v38 }
 0x351   :  { %1797 = vmatpush.bf16.msrb.mxu1 %v1995_v48 }
 0x3a2   :  { %v2076_v0 = vpop.permute.xlu2 %2075 }
 0x3a3   :  { %v2078_v22 = vunpack.i.h.bf16 %v2076_v0  ;;  %v2077_v54 = vunpack.i.l.bf16 %v2076_v0 }
 0x3b9   :  { %v2071_v61 = vpop.permute.xlu1 %2070 }
 0x3ba   :  { %v2073_v41 = vunpack.i.h.bf16 %v2071_v61  ;;  %v2072_v7 = vunpack.i.l.bf16 %v2071_v61 }
 0x3bc   :  { %v2066_v4 = vpop.permute.xlu0 %2065 }
 0x3bd   :  { %v2068_v28 = vunpack.i.h.bf16 %v2066_v4  ;;  %v2067_v39 = vunpack.i.l.bf16 %v2066_v4 }
 0x3bf   :  { %v1713_v52 = vsel %vm1066_vm1, %v2888_v62, %v2067_v39  ;;  %v1714_v16 = vsel %vm1066_vm1, %v1682_v19, %v2068_v28 }
 0x3c0   :  { %v1716_v43 = vsel %vm1715_vm4, %v1713_v52, %v2072_v7  ;;  %v1717_v27 = vsel %vm1715_vm4, %v1714_v16, %v2073_v41 }
 0x3c1   :  { %v1719_v44 = vsel %vm1718_vm5, %v1716_v43, %v2077_v54  ;;  %v1720_v49 = vsel %vm1718_vm5, %v1717_v27, %v2078_v22 }
 0x3c2   :  { %v1721_v50 = vpack.c.bf16 %v1720_v49, %v1719_v44 }
 0x3c4   :  { %1798 = vmatmul.bf16.vlgmr.msrb.gmra.mxu1 %v1721_v50 }
 0x441   :  { %v1799_v51 = vpop.f32.mrf.mxu1 }
 0x442   :  { %v1800_v3 = vadd.f32 %v2079_v12, %v1799_v51 }
 0x444   :  { %1804 = vst [vmem:[#allocation11] sm:$0xff] %v1800_v3 }
 0x449   :  { %v1801_v20 = vpop.f32.mrf.mxu1 }
 0x44a   :  { %v1802_v23 = vadd.f32 %v2079_v12, %v1801_v20 }
 0x44c   :  { %1805 = vst [vmem:[#allocation11 + $0x8] sm:$0xff] %v1802_v23 }
 0x44d   :  { %1818 = dma.vmem_to_hbm [thread:$0]  %s1811_s28, 256, %s1813_s7, [#allocation4], %s2267_s14, %s2267_s14, %s2268_s3  }
 0x44e   :  { %2262 = dma.done.wait [#allocation4], 256  }
 0x44f   :  { %2263 = vsyncadd [#allocation4], 4294967040 }
 0x450   :  { %1823 = vsyncpa [#allocation3], 1 }
 0x451   :  { %1824 = vsyncpa [#allocation6], 1 }
 0x452   :  { %1825 = vsyncpa [#allocation9], 1 }
 0x453   :  { %1826 = vsyncpa [#allocation4], 1 }

</bundles_post_ra>
